<compile_context>
chip_gen: v7x
topology: tpu7x:2x2x1
jax: 0.10.0
libtpu: 0.0.40
codegen_flags: <defaults>
</compile_context>

<pallas_src>
import numpy as np
import jax
import jax.numpy as jnp
from jax.experimental import pallas as pl
from jax.experimental.pallas import tpu as pltpu

_VMEM_LIMIT = 32 * 1024 * 1024   # explicit scoped-VMEM budget (fits v5e/v6e/v7x)


# ----------------------------------------------------------------------------- helpers

def _full_spec(shape):
    nd = len(shape)
    return pl.BlockSpec(tuple(int(s) for s in shape), lambda i, _nd=nd: (0,) * _nd)


def _pick_row_tile(m, target=256):
    """Largest row tile <= target that divides m and is a multiple of 8 (else full m)."""
    if m <= target:
        return m
    t = (target // 8) * 8
    while t >= 8:
        if m % t == 0:
            return t
        t -= 8
    return m


def _sigmoid(x):
    return 1.0 / (1.0 + jnp.exp(-x))


# ----------------------------------------------------------------------------- kernels

def conv_relu_pool_kernel(v_ref, w_ref, b_ref, o_ref):
    """Fused ConvBlock tile: one matmul over all pooling views, max over views,
    then bias + ReLU (hoisted after the max).

    v_ref : (n_view, Mt, K) im2col patches (one view per pooling offset)
    w_ref : (K, Cout);  b_ref : (1, Cout);  o_ref : (Mt, Cout)
    """
    nv, mt, k = v_ref.shape
    cout = w_ref.shape[-1]
    y = jnp.dot(v_ref[...].reshape(nv * mt, k), w_ref[...],
                preferred_element_type=jnp.float32)          # single MXU matmul per tile
    y = jnp.max(y.reshape(nv, mt, cout), axis=0)              # max-pool over shifted views
    o_ref[...] = jnp.maximum(y + b_ref[...], 0.0)             # bias + ReLU once


def dense_bias_kernel(x_ref, w_ref, b_ref, o_ref):
    """Row-tiled y = x @ w + b (used for the hoisted GRU input projection)."""
    o_ref[...] = jnp.dot(x_ref[...], w_ref[...],
                         preferred_element_type=jnp.float32) + b_ref[...]


def gru_kernel(gif_ref, gib_ref, whhf_ref, bhhf_ref, whhb_ref, bhhb_ref,
               of_ref, ob_ref, hf_s, hb_s):
    """Bidirectional single-layer GRU recurrence (PyTorch gate order r, z, n).

    Input projections (x @ W_ih^T + b_ih) are precomputed:
      gif_ref : (T, B, 3H) forward-direction input gates
      gib_ref : (T, B, 3H) backward-direction input gates
    whh* : (H, 3H) hidden weights (already transposed);  bhh* : (1, 3H)
    Outputs: of (T, B, H) forward hidden, ob (T, B, H) backward hidden.
    Both directions advance in the same loop iteration (T serial steps total).
    """
    T = gif_ref.shape[0]
    H = of_ref.shape[-1]

    hf_s[...] = jnp.zeros_like(hf_s)
    hb_s[...] = jnp.zeros_like(hb_s)
    whf = whhf_ref[...]
    bhf = bhhf_ref[...]
    whb = whhb_ref[...]
    bhb = bhhb_ref[...]

    @pl.loop(0, T)
    def _(s):
        tb = T - 1 - s
        gif = gif_ref[s]                  # (B, 3H) at time s       (forward)
        gib = gib_ref[tb]                 # (B, 3H) at time T-1-s   (backward)
        hf = hf_s[...]
        hb = hb_s[...]
        ghf = jnp.dot(hf, whf, preferred_element_type=jnp.float32) + bhf
        ghb = jnp.dot(hb, whb, preferred_element_type=jnp.float32) + bhb

        rf = jax.nn.sigmoid(gif[:, :H] + ghf[:, :H])
        zf = jax.nn.sigmoid(gif[:, H:2 * H] + ghf[:, H:2 * H])
        nf = jnp.tanh(gif[:, 2 * H:] + rf * ghf[:, 2 * H:])
        hfn = (1.0 - zf) * nf + zf * hf

        rb = jax.nn.sigmoid(gib[:, :H] + ghb[:, :H])
        zb = jax.nn.sigmoid(gib[:, H:2 * H] + ghb[:, H:2 * H])
        nb = jnp.tanh(gib[:, 2 * H:] + rb * ghb[:, 2 * H:])
        hbn = (1.0 - zb) * nb + zb * hb

        hf_s[...] = hfn
        hb_s[...] = hbn
        of_ref[s] = hfn
        ob_ref[tb] = hbn


def att_head_kernel(h_ref, w_ref, b_ref, o_ref, m_s, den_s, num_s):
    """Fused fc_prob + fc_att + sigmoid/clamp + online softmax over time + pooling.

    Grid = (class_tiles, T).  Per step:
      h_ref : (1, B, E) hidden at time t;  w_ref : (1, E, 2*Ct) [fc_prob | fc_att] tile;
      b_ref : (1, 1, 2*Ct);  o_ref : (B, Ct) pooled probs (written at last t).
    Scratch: running max, softmax denominator, weighted numerator — (B, Ct) each.
    """
    t = pl.program_id(1)

    @pl.when(t == 0)
    def _():
        m_s[...] = jnp.full_like(m_s, -jnp.inf)
        den_s[...] = jnp.zeros_like(den_s)
        num_s[...] = jnp.zeros_like(num_s)

    ct = o_ref.shape[-1]
    logits = jnp.dot(h_ref[0], w_ref[0],
                     preferred_element_type=jnp.float32) + b_ref[0]   # (B, 2*Ct)
    lp = logits[:, :ct]
    la = logits[:, ct:]
    prob = jnp.clip(jax.nn.sigmoid(lp), 1e-7, 1.0 - 1e-7)

    m_new = jnp.maximum(m_s[...], la)
    alpha = jnp.exp(m_s[...] - m_new)
    e = jnp.exp(la - m_new)
    den_s[...] = alpha * den_s[...] + e
    num_s[...] = alpha * num_s[...] + prob * e
    m_s[...] = m_new

    @pl.when(t == pl.num_programs(1) - 1)
    def _():
        # approx=False keeps 1e-4 parity with the reference; flip to approx=True for
        # the (EUP-slot) micro-win if looser accuracy is acceptable.
        o_ref[...] = num_s[...] * pl.reciprocal(den_s[...], approx=False)


# ----------------------------------------------------------------------------- pallas wrappers

def conv_block_apply(act, w_pt, b, pool):
    """One ConvBlock (conv 3x3 SAME + bias + ReLU + optional max-pool) via Pallas."""
    cout, cin, KH, KW = w_pt.shape
    Bc, Hc, Wc, _ = act.shape
    K = KH * KW * cin
    xpad = jnp.pad(act, ((0, 0), (KH // 2, KH // 2), (KW // 2, KW // 2), (0, 0)))
    cols = []
    for kh in range(KH):
        for kw in range(KW):
            cols.append(xpad[:, kh:kh + Hc, kw:kw + Wc, :])
    patches = jnp.concatenate(cols, axis=-1)                 # (B, H, W, K)

    ph, pw = pool if pool is not None else (1, 1)
    Ho, Wo = Hc // ph, Wc // pw
    M = Bc * Ho * Wo
    views = [patches[:, p::ph, q::pw, :].reshape(M, K)
             for p in range(ph) for q in range(pw)]
    views_arr = jnp.stack(views, axis=0)                     # (n_view, M, K)
    nv = len(views)

    w2 = jnp.transpose(w_pt, (2, 3, 1, 0)).reshape(K, cout)  # (K, Cout)
    b2 = b.reshape(1, cout)

    mt = _pick_row_tile(M)
    out_flat = pl.pallas_call(
        conv_relu_pool_kernel,
        grid=(M // mt,),
        in_specs=[pl.BlockSpec((nv, mt, K), lambda i: (0, i, 0)),
                  pl.BlockSpec((K, cout), lambda i: (0, 0)),
                  pl.BlockSpec((1, cout), lambda i: (0, 0))],
        out_specs=pl.BlockSpec((mt, cout), lambda i: (i, 0)),
        out_shape=jax.ShapeDtypeStruct((M, cout), jnp.float32),
        compiler_params=pltpu.CompilerParams(
            dimension_semantics=("parallel",), vmem_limit_bytes=_VMEM_LIMIT),
    )(views_arr, w2, b2)
    return out_flat.reshape(Bc, Ho, Wo, cout)


def dense_bias(x, w, b):
    m, k = x.shape
    n = w.shape[1]
    mt = _pick_row_tile(m)
    return pl.pallas_call(
        dense_bias_kernel,
        grid=(m // mt,),
        in_specs=[pl.BlockSpec((mt, k), lambda i: (i, 0)),
                  pl.BlockSpec((k, n), lambda i: (0, 0)),
                  pl.BlockSpec((1, n), lambda i: (0, 0))],
        out_specs=pl.BlockSpec((mt, n), lambda i: (i, 0)),
        out_shape=jax.ShapeDtypeStruct((m, n), jnp.float32),
        compiler_params=pltpu.CompilerParams(
            dimension_semantics=("parallel",), vmem_limit_bytes=_VMEM_LIMIT),
    )(x, w, b)


# ----------------------------------------------------------------------------- config / params

def conv_layer_configs(cfg):
    assert cfg['n_conv_layers'] % cfg['n_pool_layers'] == 0
    pool_interval = cfg['n_conv_layers'] // cfg['n_pool_layers']
    n_freq = cfg['n_mels']
    n_input = 1
    cfgs = []
    for i in range(cfg['n_conv_layers']):
        if (i + 1) % pool_interval == 0:
            n_freq //= 2
            n_output = cfg['embedding_size'] // n_freq
            pool = (2, 2) if i < pool_interval * 2 else (1, 2)
        else:
            n_output = (cfg['embedding_size'] * 2) // n_freq
            pool = None
        cfgs.append((n_input, n_output, pool))
        n_input = n_output
    return cfgs


def init_params(key, cfg):
    ks = iter(jax.random.split(key, 64))

    def nrm(shape, scale=0.1):
        return (scale * jax.random.normal(next(ks), shape)).astype(jnp.float32)

    conv = []
    for (cin, cout, pool) in cfg['conv_cfgs']:
        conv.append({'w': nrm((cout, cin, 3, 3)),   # PyTorch Conv2d layout (Cout, Cin, KH, KW)
                     'b': nrm((cout,)),
                     'pool': pool})
    E = cfg['embedding_size']
    H = E // 2
    gru = {}
    for d in ('fwd', 'bwd'):
        gru[d] = {'w_ih': nrm((3 * H, E)), 'w_hh': nrm((3 * H, H)),
                  'b_ih': nrm((3 * H,)), 'b_hh': nrm((3 * H,))}
    C = cfg['output_size']
    fc_prob = {'w': nrm((C, E)), 'b': nrm((C,))}
    fc_att = {'w': nrm((C, E)), 'b': nrm((C,))}
    return {'conv': conv, 'gru': gru, 'fc_prob': fc_prob, 'fc_att': fc_att}


# ----------------------------------------------------------------------------- forward (Pallas)

def talnet_forward_pallas(x, params, cfg):
    B, T0, F0 = x.shape
    act = x.reshape(B, T0, F0, 1).astype(jnp.float32)         # NHWC

    # --- conv stack ---------------------------------------------------------
    for layer in params['conv']:
        act = conv_block_apply(act, layer['w'], layer['b'], layer['pool'])

    # PyTorch: permute(0,2,1,3) on NCHW then flatten -> (B, T, C*F)
    Bc, Tc, Fc, Cc = act.shape
    emb = jnp.transpose(act, (0, 1, 3, 2)).reshape(Bc, Tc, Cc * Fc)
    E = cfg['embedding_size']
    H = E // 2
    assert Cc * Fc == E

    # --- GRU ----------------------------------------------------------------
    xg = jnp.transpose(emb, (1, 0, 2))                        # (T, B, E), time-major
    gru_f, gru_b = params['gru']['fwd'], params['gru']['bwd']

    # Hoisted input projection for both directions: one (T*B, E) x (E, 6H) matmul.
    wih_cat = jnp.concatenate([gru_f['w_ih'].T, gru_b['w_ih'].T], axis=1)   # (E, 6H)
    bih_cat = jnp.concatenate([gru_f['b_ih'], gru_b['b_ih']]).reshape(1, 6 * H)
    gi_all = dense_bias(xg.reshape(Tc * Bc, E), wih_cat, bih_cat)           # (T*B, 6H)
    gi_f = gi_all[:, :3 * H].reshape(Tc, Bc, 3 * H)
    gi_b = gi_all[:, 3 * H:].reshape(Tc, Bc, 3 * H)

    whh_f = gru_f['w_hh'].T                                   # (H, 3H)
    whh_b = gru_b['w_hh'].T
    bhh_f = gru_f['b_hh'].reshape(1, 3 * H)
    bhh_b = gru_b['b_hh'].reshape(1, 3 * H)

    of, ob = pl.pallas_call(
        gru_kernel,
        grid=(1,),
        in_specs=[_full_spec(a.shape) for a in
                  (gi_f, gi_b, whh_f, bhh_f, whh_b, bhh_b)],
        out_specs=(_full_spec((Tc, Bc, H)), _full_spec((Tc, Bc, H))),
        out_shape=(jax.ShapeDtypeStruct((Tc, Bc, H), jnp.float32),
                   jax.ShapeDtypeStruct((Tc, Bc, H), jnp.float32)),
        scratch_shapes=[pltpu.VMEM((Bc, H), jnp.float32),
                        pltpu.VMEM((Bc, H), jnp.float32)],
        compiler_params=pltpu.CompilerParams(
            dimension_semantics=("arbitrary",), vmem_limit_bytes=_VMEM_LIMIT),
    )(gi_f, gi_b, whh_f, bhh_f, whh_b, bhh_b)
    hseq = jnp.concatenate([of, ob], axis=-1)                 # (T, B, E)

    # --- attention pooling head --------------------------------------------
    C = cfg['output_size']
    Ct = 128
    Cp = ((C + Ct - 1) // Ct) * Ct                            # 527 -> 640 (lane-dense)
    nT = Cp // Ct
    pad = Cp - C
    wp = jnp.pad(params['fc_prob']['w'].T, ((0, 0), (0, pad)))   # (E, Cp)
    wa = jnp.pad(params['fc_att']['w'].T, ((0, 0), (0, pad)))
    bp = jnp.pad(params['fc_prob']['b'], (0, pad))
    ba = jnp.pad(params['fc_att']['b'], (0, pad))
    # Fused per-tile weight layout: tile j holds [fc_prob cols | fc_att cols] side by side.
    w_fused = jnp.concatenate([wp.reshape(E, nT, Ct).transpose(1, 0, 2),
                               wa.reshape(E, nT, Ct).transpose(1, 0, 2)], axis=-1)  # (nT, E, 2Ct)
    b_fused = jnp.concatenate([bp.reshape(nT, 1, Ct),
                               ba.reshape(nT, 1, Ct)], axis=-1)                     # (nT, 1, 2Ct)

    out_pad = pl.pallas_call(
        att_head_kernel,
        grid=(nT, Tc),
        in_specs=[pl.BlockSpec((1, Bc, E), lambda j, t: (t, 0, 0)),
                  pl.BlockSpec((1, E, 2 * Ct), lambda j, t: (j, 0, 0)),
                  pl.BlockSpec((1, 1, 2 * Ct), lambda j, t: (j, 0, 0))],
        out_specs=pl.BlockSpec((Bc, Ct), lambda j, t: (0, j)),
        out_shape=jax.ShapeDtypeStruct((Bc, Cp), jnp.float32),
        scratch_shapes=[pltpu.VMEM((Bc, Ct), jnp.float32),
                        pltpu.VMEM((Bc, Ct), jnp.float32),
                        pltpu.VMEM((Bc, Ct), jnp.float32)],
        compiler_params=pltpu.CompilerParams(
            dimension_semantics=("parallel", "arbitrary"),
            vmem_limit_bytes=_VMEM_LIMIT),
    )(hseq, w_fused, b_fused)

    # Padded class columns (zero weights/bias) are independent of the real ones
    # (softmax is over time, per class) — slice them off.
    return out_pad[:, :C]                                     # global_prob, (B, 527)


# ----------------------------------------------------------------------------- pure-JAX reference

def talnet_forward_ref(x, params, cfg):
    B, T0, F0 = x.shape
    act = x.reshape(B, T0, F0, 1).astype(jnp.float32)
    for layer in params['conv']:
        w_pt, b, pool = layer['w'], layer['b'], layer['pool']
        w_hwio = jnp.transpose(w_pt, (2, 3, 1, 0))
        y = jax.lax.conv_general_dilated(act, w_hwio, (1, 1), 'SAME',
                                         dimension_numbers=('NHWC', 'HWIO', 'NHWC'))
        y = jnp.maximum(y + b.reshape(1, 1, 1, -1), 0.0)
        if pool is not None:
            y = jax.lax.reduce_window(y, -jnp.inf, jax.lax.max,
                                      (1, pool[0], pool[1], 1),
                                      (1, pool[0], pool[1], 1), 'VALID')
        act = y
    Bc, Tc, Fc, Cc = act.shape
    emb = jnp.transpose(act, (0, 1, 3, 2)).reshape(Bc, Tc, Cc * Fc)
    E = cfg['embedding_size']
    H = E // 2
    xg = jnp.transpose(emb, (1, 0, 2))

    def run_dir(p, reverse):
        w_ih, w_hh, b_ih, b_hh = p['w_ih'], p['w_hh'], p['b_ih'], p['b_hh']
        h = jnp.zeros((Bc, H), jnp.float32)
        outs = [None] * Tc
        order = range(Tc - 1, -1, -1) if reverse else range(Tc)
        for t in order:
            xt = xg[t]
            gi = xt @ w_ih.T + b_ih
            gh = h @ w_hh.T + b_hh
            r = _sigmoid(gi[:, :H] + gh[:, :H])
            z = _sigmoid(gi[:, H:2 * H] + gh[:, H:2 * H])
            n = jnp.tanh(gi[:, 2 * H:] + r * gh[:, 2 * H:])
            h = (1.0 - z) * n + z * h
            outs[t] = h
        return jnp.stack(outs, axis=0)

    hf = run_dir(params['gru']['fwd'], False)
    hb = run_dir(params['gru']['bwd'], True)
    hbt = jnp.transpose(jnp.concatenate([hf, hb], axis=-1), (1, 0, 2))   # (B, T, E)
    lp = hbt @ params['fc_prob']['w'].T + params['fc_prob']['b']
    frame_prob = jnp.clip(_sigmoid(lp), 1e-7, 1.0 - 1e-7)
    la = hbt @ params['fc_att']['w'].T + params['fc_att']['b']
    frame_att = jax.nn.softmax(la, axis=1)                               # softmax over time
    return jnp.sum(frame_prob * frame_att, axis=1)                       # (B, 527)


# ----------------------------------------------------------------------------- main

if __name__ == "__main__":
    cfg = dict(n_conv_layers=4, n_pool_layers=2, embedding_size=32, n_mels=16,
               kernel_size=(3, 3), batch_norm=False, dropout=0.0, pooling='att',
               output_size=527)
    cfg['conv_cfgs'] = conv_layer_configs(cfg)

    key = jax.random.PRNGKey(0)
    kp, kx = jax.random.split(key)
    params = init_params(kp, cfg)
    x = jax.random.normal(kx, (2, 16, cfg['n_mels']), dtype=jnp.float32)  # (B, T, n_mels)

    fwd = jax.jit(lambda xx: talnet_forward_pallas(xx, params, cfg))
    out = jax.block_until_ready(fwd(x))
    assert out.shape == (2, cfg['output_size'])

    ref = talnet_forward_ref(x, params, cfg)
    np.testing.assert_allclose(np.asarray(out), np.asarray(ref), rtol=5e-4, atol=5e-4)

    print("KERNEL_OK")
</pallas_src>

<mosaic_0001>
module attributes {stable_mosaic.version = 11 : i64} {
  func.func @conv_relu_pool_kernel(%arg0: i32, %arg1: memref<1x256x9xf32, #tpu.memory_space<vmem>>, %arg2: memref<9x4xf32, #tpu.memory_space<vmem>>, %arg3: memref<1x4xf32, #tpu.memory_space<vmem>>, %arg4: memref<256x4xf32, #tpu.memory_space<vmem>>) attributes {dimension_semantics = [#tpu.dimension_semantics<parallel>], iteration_bounds = array<i64: 2>, scalar_prefetch = 0 : i64, scratch_operands = 0 : i64, tpu.core_type = #tpu.core_type<tc>, window_params = [{transform_indices = @transform_0, window_bounds = array<i64: 1, 256, 9>}, {pipeline_mode = #tpu.pipeline_mode<synchronous>, transform_indices = @transform_1, window_bounds = array<i64: 9, 4>}, {pipeline_mode = #tpu.pipeline_mode<synchronous>, transform_indices = @transform_2, window_bounds = array<i64: 1, 4>}, {transform_indices = @transform_3, window_bounds = array<i64: 256, 4>}]} {
    %c0 = arith.constant 0 : index
    %c0_0 = arith.constant 0 : index
    %c0_1 = arith.constant 0 : index
    %0 = vector.load %arg1[%c0, %c0_0, %c0_1] : memref<1x256x9xf32, #tpu.memory_space<vmem>>, vector<1x256x9xf32>
    %1 = vector.shape_cast %0 : vector<1x256x9xf32> to vector<256x9xf32>
    %c0_2 = arith.constant 0 : index
    %c0_3 = arith.constant 0 : index
    %2 = vector.load %arg2[%c0_2, %c0_3] : memref<9x4xf32, #tpu.memory_space<vmem>>, vector<9x4xf32>
    %cst = arith.constant dense<0.000000e+00> : vector<256x4xf32>
    %3 = tpu.matmul %1, %2, %cst {dimension_numbers = #tpu.dot_dimension_numbers<[1], [0], [0], [1], [0, 0, 1, 1], [], []>} : vector<256x9xf32>, vector<9x4xf32>, vector<256x4xf32> -> vector<256x4xf32>
    %4 = vector.shape_cast %3 : vector<256x4xf32> to vector<1x256x4xf32>
    %cst_4 = arith.constant dense<0xFF800000> : vector<256x4xf32>
    %5 = vector.multi_reduction <maximumf>, %4, %cst_4 [0] : vector<1x256x4xf32> to vector<256x4xf32>
    %c0_5 = arith.constant 0 : index
    %c0_6 = arith.constant 0 : index
    %6 = vector.load %arg3[%c0_5, %c0_6] : memref<1x4xf32, #tpu.memory_space<vmem>>, vector<1x4xf32>
    %7 = vector.broadcast %6 : vector<1x4xf32> to vector<256x4xf32>
    %8 = arith.addf %5, %7 : vector<256x4xf32>
    %cst_7 = arith.constant 0.000000e+00 : f32
    %9 = vector.broadcast %cst_7 : f32 to vector<256x4xf32>
    %10 = arith.maximumf %8, %9 : vector<256x4xf32>
    %c0_8 = arith.constant 0 : index
    %c0_9 = arith.constant 0 : index
    %11 = vector.load %arg4[%c0_8, %c0_9] : memref<256x4xf32, #tpu.memory_space<vmem>>, vector<256x4xf32>
    tpu.vector_store %arg4[%c0_8, %c0_9], %10 {strides = array<i32>} : memref<256x4xf32, #tpu.memory_space<vmem>>, vector<256x4xf32>,
    return
  }
  func.func @transform_0(%arg0: i32) -> (i32, i32, i32) {
    %c0_i32 = arith.constant 0 : i32
    %c0_i32_0 = arith.constant 0 : i32
    %c0_i32_1 = arith.constant 0 : i32
    return %c0_i32, %arg0, %c0_i32_0 : i32, i32, i32
  }
  func.func @transform_1(%arg0: i32) -> (i32, i32) {
    %c0_i32 = arith.constant 0 : i32
    %c0_i32_0 = arith.constant 0 : i32
    %c0_i32_1 = arith.constant 0 : i32
    return %c0_i32, %c0_i32_0 : i32, i32
  }
  func.func @transform_2(%arg0: i32) -> (i32, i32) {
    %c0_i32 = arith.constant 0 : i32
    %c0_i32_0 = arith.constant 0 : i32
    %c0_i32_1 = arith.constant 0 : i32
    return %c0_i32, %c0_i32_0 : i32, i32
  }
  func.func @transform_3(%arg0: i32) -> (i32, i32) {
    %c0_i32 = arith.constant 0 : i32
    %c0_i32_0 = arith.constant 0 : i32
    return %arg0, %c0_i32 : i32, i32
  }
}

module attributes {stable_mosaic.version = 11 : i64} {
  func.func @conv_relu_pool_kernel(%arg0: i32, %arg1: memref<4x128x36xf32, #tpu.memory_space<vmem>>, %arg2: memref<36x4xf32, #tpu.memory_space<vmem>>, %arg3: memref<1x4xf32, #tpu.memory_space<vmem>>, %arg4: memref<128x4xf32, #tpu.memory_space<vmem>>) attributes {dimension_semantics = [#tpu.dimension_semantics<parallel>], iteration_bounds = array<i64: 1>, scalar_prefetch = 0 : i64, scratch_operands = 0 : i64, tpu.core_type = #tpu.core_type<tc>, window_params = [{transform_indices = @transform_0, window_bounds = array<i64: 4, 128, 36>}, {pipeline_mode = #tpu.pipeline_mode<synchronous>, transform_indices = @transform_1, window_bounds = array<i64: 36, 4>}, {pipeline_mode = #tpu.pipeline_mode<synchronous>, transform_indices = @transform_2, window_bounds = array<i64: 1, 4>}, {transform_indices = @transform_3, window_bounds = array<i64: 128, 4>}]} {
    %c0 = arith.constant 0 : index
    %c0_0 = arith.constant 0 : index
    %c0_1 = arith.constant 0 : index
    %0 = vector.load %arg1[%c0, %c0_0, %c0_1] : memref<4x128x36xf32, #tpu.memory_space<vmem>>, vector<4x128x36xf32>
    %1 = vector.shape_cast %0 : vector<4x128x36xf32> to vector<512x36xf32>
    %c0_2 = arith.constant 0 : index
    %c0_3 = arith.constant 0 : index
    %2 = vector.load %arg2[%c0_2, %c0_3] : memref<36x4xf32, #tpu.memory_space<vmem>>, vector<36x4xf32>
    %cst = arith.constant dense<0.000000e+00> : vector<512x4xf32>
    %3 = tpu.matmul %1, %2, %cst {dimension_numbers = #tpu.dot_dimension_numbers<[1], [0], [0], [1], [0, 0, 1, 1], [], []>} : vector<512x36xf32>, vector<36x4xf32>, vector<512x4xf32> -> vector<512x4xf32>
    %4 = vector.shape_cast %3 : vector<512x4xf32> to vector<4x128x4xf32>
    %cst_4 = arith.constant dense<0xFF800000> : vector<128x4xf32>
    %5 = vector.multi_reduction <maximumf>, %4, %cst_4 [0] : vector<4x128x4xf32> to vector<128x4xf32>
    %c0_5 = arith.constant 0 : index
    %c0_6 = arith.constant 0 : index
    %6 = vector.load %arg3[%c0_5, %c0_6] : memref<1x4xf32, #tpu.memory_space<vmem>>, vector<1x4xf32>
    %7 = vector.broadcast %6 : vector<1x4xf32> to vector<128x4xf32>
    %8 = arith.addf %5, %7 : vector<128x4xf32>
    %cst_7 = arith.constant 0.000000e+00 : f32
    %9 = vector.broadcast %cst_7 : f32 to vector<128x4xf32>
    %10 = arith.maximumf %8, %9 : vector<128x4xf32>
    %c0_8 = arith.constant 0 : index
    %c0_9 = arith.constant 0 : index
    %11 = vector.load %arg4[%c0_8, %c0_9] : memref<128x4xf32, #tpu.memory_space<vmem>>, vector<128x4xf32>
    tpu.vector_store %arg4[%c0_8, %c0_9], %10 {strides = array<i32>} : memref<128x4xf32, #tpu.memory_space<vmem>>, vector<128x4xf32>,
    return
  }
  func.func @transform_0(%arg0: i32) -> (i32, i32, i32) {
    %c0_i32 = arith.constant 0 : i32
    %c0_i32_0 = arith.constant 0 : i32
    %c0_i32_1 = arith.constant 0 : i32
    return %c0_i32, %arg0, %c0_i32_0 : i32, i32, i32
  }
  func.func @transform_1(%arg0: i32) -> (i32, i32) {
    %c0_i32 = arith.constant 0 : i32
    %c0_i32_0 = arith.constant 0 : i32
    %c0_i32_1 = arith.constant 0 : i32
    return %c0_i32, %c0_i32_0 : i32, i32
  }
  func.func @transform_2(%arg0: i32) -> (i32, i32) {
    %c0_i32 = arith.constant 0 : i32
    %c0_i32_0 = arith.constant 0 : i32
    %c0_i32_1 = arith.constant 0 : i32
    return %c0_i32, %c0_i32_0 : i32, i32
  }
  func.func @transform_3(%arg0: i32) -> (i32, i32) {
    %c0_i32 = arith.constant 0 : i32
    %c0_i32_0 = arith.constant 0 : i32
    return %arg0, %c0_i32 : i32, i32
  }
}

module attributes {stable_mosaic.version = 11 : i64} {
  func.func @conv_relu_pool_kernel(%arg0: i32, %arg1: memref<1x128x36xf32, #tpu.memory_space<vmem>>, %arg2: memref<36x8xf32, #tpu.memory_space<vmem>>, %arg3: memref<1x8xf32, #tpu.memory_space<vmem>>, %arg4: memref<128x8xf32, #tpu.memory_space<vmem>>) attributes {dimension_semantics = [#tpu.dimension_semantics<parallel>], iteration_bounds = array<i64: 1>, scalar_prefetch = 0 : i64, scratch_operands = 0 : i64, tpu.core_type = #tpu.core_type<tc>, window_params = [{transform_indices = @transform_0, window_bounds = array<i64: 1, 128, 36>}, {pipeline_mode = #tpu.pipeline_mode<synchronous>, transform_indices = @transform_1, window_bounds = array<i64: 36, 8>}, {pipeline_mode = #tpu.pipeline_mode<synchronous>, transform_indices = @transform_2, window_bounds = array<i64: 1, 8>}, {transform_indices = @transform_3, window_bounds = array<i64: 128, 8>}]} {
    %c0 = arith.constant 0 : index
    %c0_0 = arith.constant 0 : index
    %c0_1 = arith.constant 0 : index
    %0 = vector.load %arg1[%c0, %c0_0, %c0_1] : memref<1x128x36xf32, #tpu.memory_space<vmem>>, vector<1x128x36xf32>
    %1 = vector.shape_cast %0 : vector<1x128x36xf32> to vector<128x36xf32>
    %c0_2 = arith.constant 0 : index
    %c0_3 = arith.constant 0 : index
    %2 = vector.load %arg2[%c0_2, %c0_3] : memref<36x8xf32, #tpu.memory_space<vmem>>, vector<36x8xf32>
    %cst = arith.constant dense<0.000000e+00> : vector<128x8xf32>
    %3 = tpu.matmul %1, %2, %cst {dimension_numbers = #tpu.dot_dimension_numbers<[1], [0], [0], [1], [0, 0, 1, 1], [], []>} : vector<128x36xf32>, vector<36x8xf32>, vector<128x8xf32> -> vector<128x8xf32>
    %4 = vector.shape_cast %3 : vector<128x8xf32> to vector<1x128x8xf32>
    %cst_4 = arith.constant dense<0xFF800000> : vector<128x8xf32>
    %5 = vector.multi_reduction <maximumf>, %4, %cst_4 [0] : vector<1x128x8xf32> to vector<128x8xf32>
    %c0_5 = arith.constant 0 : index
    %c0_6 = arith.constant 0 : index
    %6 = vector.load %arg3[%c0_5, %c0_6] : memref<1x8xf32, #tpu.memory_space<vmem>>, vector<1x8xf32>
    %7 = vector.broadcast %6 : vector<1x8xf32> to vector<128x8xf32>
    %8 = arith.addf %5, %7 : vector<128x8xf32>
    %cst_7 = arith.constant 0.000000e+00 : f32
    %9 = vector.broadcast %cst_7 : f32 to vector<128x8xf32>
    %10 = arith.maximumf %8, %9 : vector<128x8xf32>
    %c0_8 = arith.constant 0 : index
    %c0_9 = arith.constant 0 : index
    %11 = vector.load %arg4[%c0_8, %c0_9] : memref<128x8xf32, #tpu.memory_space<vmem>>, vector<128x8xf32>
    tpu.vector_store %arg4[%c0_8, %c0_9], %10 {strides = array<i32>} : memref<128x8xf32, #tpu.memory_space<vmem>>, vector<128x8xf32>,
    return
  }
  func.func @transform_0(%arg0: i32) -> (i32, i32, i32) {
    %c0_i32 = arith.constant 0 : i32
    %c0_i32_0 = arith.constant 0 : i32
    %c0_i32_1 = arith.constant 0 : i32
    return %c0_i32, %arg0, %c0_i32_0 : i32, i32, i32
  }
  func.func @transform_1(%arg0: i32) -> (i32, i32) {
    %c0_i32 = arith.constant 0 : i32
    %c0_i32_0 = arith.constant 0 : i32
    %c0_i32_1 = arith.constant 0 : i32
    return %c0_i32, %c0_i32_0 : i32, i32
  }
  func.func @transform_2(%arg0: i32) -> (i32, i32) {
    %c0_i32 = arith.constant 0 : i32
    %c0_i32_0 = arith.constant 0 : i32
    %c0_i32_1 = arith.constant 0 : i32
    return %c0_i32, %c0_i32_0 : i32, i32
  }
  func.func @transform_3(%arg0: i32) -> (i32, i32) {
    %c0_i32 = arith.constant 0 : i32
    %c0_i32_0 = arith.constant 0 : i32
    return %arg0, %c0_i32 : i32, i32
  }
}

module attributes {stable_mosaic.version = 11 : i64} {
  func.func @conv_relu_pool_kernel(%arg0: i32, %arg1: memref<4x32x72xf32, #tpu.memory_space<vmem>>, %arg2: memref<72x8xf32, #tpu.memory_space<vmem>>, %arg3: memref<1x8xf32, #tpu.memory_space<vmem>>, %arg4: memref<32x8xf32, #tpu.memory_space<vmem>>) attributes {dimension_semantics = [#tpu.dimension_semantics<parallel>], iteration_bounds = array<i64: 1>, scalar_prefetch = 0 : i64, scratch_operands = 0 : i64, tpu.core_type = #tpu.core_type<tc>, window_params = [{transform_indices = @transform_0, window_bounds = array<i64: 4, 32, 72>}, {pipeline_mode = #tpu.pipeline_mode<synchronous>, transform_indices = @transform_1, window_bounds = array<i64: 72, 8>}, {pipeline_mode = #tpu.pipeline_mode<synchronous>, transform_indices = @transform_2, window_bounds = array<i64: 1, 8>}, {transform_indices = @transform_3, window_bounds = array<i64: 32, 8>}]} {
    %c0 = arith.constant 0 : index
    %c0_0 = arith.constant 0 : index
    %c0_1 = arith.constant 0 : index
    %0 = vector.load %arg1[%c0, %c0_0, %c0_1] : memref<4x32x72xf32, #tpu.memory_space<vmem>>, vector<4x32x72xf32>
    %1 = vector.shape_cast %0 : vector<4x32x72xf32> to vector<128x72xf32>
    %c0_2 = arith.constant 0 : index
    %c0_3 = arith.constant 0 : index
    %2 = vector.load %arg2[%c0_2, %c0_3] : memref<72x8xf32, #tpu.memory_space<vmem>>, vector<72x8xf32>
    %cst = arith.constant dense<0.000000e+00> : vector<128x8xf32>
    %3 = tpu.matmul %1, %2, %cst {dimension_numbers = #tpu.dot_dimension_numbers<[1], [0], [0], [1], [0, 0, 1, 1], [], []>} : vector<128x72xf32>, vector<72x8xf32>, vector<128x8xf32> -> vector<128x8xf32>
    %4 = vector.shape_cast %3 : vector<128x8xf32> to vector<4x32x8xf32>
    %cst_4 = arith.constant dense<0xFF800000> : vector<32x8xf32>
    %5 = vector.multi_reduction <maximumf>, %4, %cst_4 [0] : vector<4x32x8xf32> to vector<32x8xf32>
    %c0_5 = arith.constant 0 : index
    %c0_6 = arith.constant 0 : index
    %6 = vector.load %arg3[%c0_5, %c0_6] : memref<1x8xf32, #tpu.memory_space<vmem>>, vector<1x8xf32>
    %7 = vector.broadcast %6 : vector<1x8xf32> to vector<32x8xf32>
    %8 = arith.addf %5, %7 : vector<32x8xf32>
    %cst_7 = arith.constant 0.000000e+00 : f32
    %9 = vector.broadcast %cst_7 : f32 to vector<32x8xf32>
    %10 = arith.maximumf %8, %9 : vector<32x8xf32>
    %c0_8 = arith.constant 0 : index
    %c0_9 = arith.constant 0 : index
    %11 = vector.load %arg4[%c0_8, %c0_9] : memref<32x8xf32, #tpu.memory_space<vmem>>, vector<32x8xf32>
    tpu.vector_store %arg4[%c0_8, %c0_9], %10 {strides = array<i32>} : memref<32x8xf32, #tpu.memory_space<vmem>>, vector<32x8xf32>,
    return
  }
  func.func @transform_0(%arg0: i32) -> (i32, i32, i32) {
    %c0_i32 = arith.constant 0 : i32
    %c0_i32_0 = arith.constant 0 : i32
    %c0_i32_1 = arith.constant 0 : i32
    return %c0_i32, %arg0, %c0_i32_0 : i32, i32, i32
  }
  func.func @transform_1(%arg0: i32) -> (i32, i32) {
    %c0_i32 = arith.constant 0 : i32
    %c0_i32_0 = arith.constant 0 : i32
    %c0_i32_1 = arith.constant 0 : i32
    return %c0_i32, %c0_i32_0 : i32, i32
  }
  func.func @transform_2(%arg0: i32) -> (i32, i32) {
    %c0_i32 = arith.constant 0 : i32
    %c0_i32_0 = arith.constant 0 : i32
    %c0_i32_1 = arith.constant 0 : i32
    return %c0_i32, %c0_i32_0 : i32, i32
  }
  func.func @transform_3(%arg0: i32) -> (i32, i32) {
    %c0_i32 = arith.constant 0 : i32
    %c0_i32_0 = arith.constant 0 : i32
    return %arg0, %c0_i32 : i32, i32
  }
}

module attributes {stable_mosaic.version = 11 : i64} {
  func.func @att_head_kernel(%arg0: i32, %arg1: i32, %arg2: memref<1x2x32xf32, #tpu.memory_space<vmem>>, %arg3: memref<1x32x256xf32, #tpu.memory_space<vmem>>, %arg4: memref<1x1x256xf32, #tpu.memory_space<vmem>>, %arg5: memref<2x128xf32, #tpu.memory_space<vmem>>, %arg6: memref<2x128xf32, #tpu.memory_space<vmem>>, %arg7: memref<2x128xf32, #tpu.memory_space<vmem>>, %arg8: memref<2x128xf32, #tpu.memory_space<vmem>>) attributes {dimension_semantics = [#tpu.dimension_semantics<parallel>, #tpu.dimension_semantics<arbitrary>], iteration_bounds = array<i64: 5, 4>, scalar_prefetch = 0 : i64, scratch_operands = 3 : i64, tpu.core_type = #tpu.core_type<tc>, window_params = [{transform_indices = @transform_0, window_bounds = array<i64: 1, 2, 32>}, {transform_indices = @transform_1, window_bounds = array<i64: 1, 32, 256>}, {transform_indices = @transform_2, window_bounds = array<i64: 1, 1, 256>}, {transform_indices = @transform_3, window_bounds = array<i64: 2, 128>}]} {
    %c0_i32 = arith.constant 0 : i32
    %0 = arith.cmpi eq, %arg1, %c0_i32 : i32
    %1 = arith.extui %0 : i1 to i32
    %c0_i32_0 = arith.constant 0 : i32
    %2 = arith.cmpi ne, %1, %c0_i32_0 : i32
    scf.if %2 {
      %cst_27 = arith.constant 0xFF800000 : f32
      %43 = vector.broadcast %cst_27 : f32 to vector<2x128xf32>
      %c0_28 = arith.constant 0 : index
      %c0_29 = arith.constant 0 : index
      %44 = vector.load %arg6[%c0_28, %c0_29] : memref<2x128xf32, #tpu.memory_space<vmem>>, vector<2x128xf32>
      tpu.vector_store %arg6[%c0_28, %c0_29], %43 {strides = array<i32>} : memref<2x128xf32, #tpu.memory_space<vmem>>, vector<2x128xf32>,
      %cst_30 = arith.constant 0.000000e+00 : f32
      %45 = vector.broadcast %cst_30 : f32 to vector<2x128xf32>
      %c0_31 = arith.constant 0 : index
      %c0_32 = arith.constant 0 : index
      %46 = vector.load %arg7[%c0_31, %c0_32] : memref<2x128xf32, #tpu.memory_space<vmem>>, vector<2x128xf32>
      tpu.vector_store %arg7[%c0_31, %c0_32], %45 {strides = array<i32>} : memref<2x128xf32, #tpu.memory_space<vmem>>, vector<2x128xf32>,
      %cst_33 = arith.constant 0.000000e+00 : f32
      %47 = vector.broadcast %cst_33 : f32 to vector<2x128xf32>
      %c0_34 = arith.constant 0 : index
      %c0_35 = arith.constant 0 : index
      %48 = vector.load %arg8[%c0_34, %c0_35] : memref<2x128xf32, #tpu.memory_space<vmem>>, vector<2x128xf32>
      tpu.vector_store %arg8[%c0_34, %c0_35], %47 {strides = array<i32>} : memref<2x128xf32, #tpu.memory_space<vmem>>, vector<2x128xf32>,
    } else {
    }
    %c0 = arith.constant 0 : index
    %c0_1 = arith.constant 0 : index
    %c0_2 = arith.constant 0 : index
    %3 = vector.load %arg2[%c0, %c0_1, %c0_2] : memref<1x2x32xf32, #tpu.memory_space<vmem>>, vector<1x2x32xf32>
    %4 = vector.shape_cast %3 : vector<1x2x32xf32> to vector<2x32xf32>
    %c0_3 = arith.constant 0 : index
    %c0_4 = arith.constant 0 : index
    %c0_5 = arith.constant 0 : index
    %5 = vector.load %arg3[%c0_3, %c0_4, %c0_5] : memref<1x32x256xf32, #tpu.memory_space<vmem>>, vector<1x32x256xf32>
    %6 = vector.shape_cast %5 : vector<1x32x256xf32> to vector<32x256xf32>
    %cst = arith.constant dense<0.000000e+00> : vector<2x256xf32>
    %7 = tpu.matmul %4, %6, %cst {dimension_numbers = #tpu.dot_dimension_numbers<[1], [0], [0], [1], [0, 0, 1, 1], [], []>} : vector<2x32xf32>, vector<32x256xf32>, vector<2x256xf32> -> vector<2x256xf32>
    %c0_6 = arith.constant 0 : index
    %c0_7 = arith.constant 0 : index
    %c0_8 = arith.constant 0 : index
    %8 = vector.load %arg4[%c0_6, %c0_7, %c0_8] : memref<1x1x256xf32, #tpu.memory_space<vmem>>, vector<1x1x256xf32>
    %9 = vector.shape_cast %8 : vector<1x1x256xf32> to vector<1x256xf32>
    %10 = vector.broadcast %9 : vector<1x256xf32> to vector<2x256xf32>
    %11 = arith.addf %7, %10 : vector<2x256xf32>
    %12 = vector.extract_strided_slice %11 {offsets = [0, 0], sizes = [2, 128], strides = [1, 1]} : vector<2x256xf32> to vector<2x128xf32>
    %13 = vector.extract_strided_slice %11 {offsets = [0, 128], sizes = [2, 128], strides = [1, 1]} : vector<2x256xf32> to vector<2x128xf32>
    %14 = arith.negf %12 : vector<2x128xf32>
    %15 = math.exp %14 : vector<2x128xf32>
    %cst_9 = arith.constant 1.000000e+00 : f32
    %16 = vector.broadcast %cst_9 : f32 to vector<2x128xf32>
    %17 = arith.addf %16, %15 : vector<2x128xf32>
    %18 = arith.divf %16, %17 : vector<2x128xf32>
    %cst_10 = arith.constant 1.000000e-07 : f32
    %cst_11 = arith.constant 0.99999988 : f32
    %19 = vector.broadcast %cst_10 : f32 to vector<2x128xf32>
    %20 = arith.maximumf %19, %18 : vector<2x128xf32>
    %21 = vector.broadcast %cst_11 : f32 to vector<2x128xf32>
    %22 = arith.minimumf %21, %20 : vector<2x128xf32>
    %c0_12 = arith.constant 0 : index
    %c0_13 = arith.constant 0 : index
    %23 = vector.load %arg6[%c0_12, %c0_13] : memref<2x128xf32, #tpu.memory_space<vmem>>, vector<2x128xf32>
    %24 = arith.maximumf %23, %13 : vector<2x128xf32>
    %c0_14 = arith.constant 0 : index
    %c0_15 = arith.constant 0 : index
    %25 = vector.load %arg6[%c0_14, %c0_15] : memref<2x128xf32, #tpu.memory_space<vmem>>, vector<2x128xf32>
    %26 = arith.subf %25, %24 : vector<2x128xf32>
    %27 = math.exp %26 : vector<2x128xf32>
    %28 = arith.subf %13, %24 : vector<2x128xf32>
    %29 = math.exp %28 : vector<2x128xf32>
    %c0_16 = arith.constant 0 : index
    %c0_17 = arith.constant 0 : index
    %30 = vector.load %arg7[%c0_16, %c0_17] : memref<2x128xf32, #tpu.memory_space<vmem>>, vector<2x128xf32>
    %31 = arith.mulf %27, %30 : vector<2x128xf32>
    %32 = arith.addf %31, %29 : vector<2x128xf32>
    %c0_18 = arith.constant 0 : index
    %c0_19 = arith.constant 0 : index
    %33 = vector.load %arg7[%c0_18, %c0_19] : memref<2x128xf32, #tpu.memory_space<vmem>>, vector<2x128xf32>
    tpu.vector_store %arg7[%c0_18, %c0_19], %32 {strides = array<i32>} : memref<2x128xf32, #tpu.memory_space<vmem>>, vector<2x128xf32>,
    %c0_20 = arith.constant 0 : index
    %c0_21 = arith.constant 0 : index
    %34 = vector.load %arg8[%c0_20, %c0_21] : memref<2x128xf32, #tpu.memory_space<vmem>>, vector<2x128xf32>
    %35 = arith.mulf %27, %34 : vector<2x128xf32>
    %36 = arith.mulf %22, %29 : vector<2x128xf32>
    %37 = arith.addf %35, %36 : vector<2x128xf32>
    %c0_22 = arith.constant 0 : index
    %c0_23 = arith.constant 0 : index
    %38 = vector.load %arg8[%c0_22, %c0_23] : memref<2x128xf32, #tpu.memory_space<vmem>>, vector<2x128xf32>
    tpu.vector_store %arg8[%c0_22, %c0_23], %37 {strides = array<i32>} : memref<2x128xf32, #tpu.memory_space<vmem>>, vector<2x128xf32>,
    %c0_24 = arith.constant 0 : index
    %c0_25 = arith.constant 0 : index
    %39 = vector.load %arg6[%c0_24, %c0_25] : memref<2x128xf32, #tpu.memory_space<vmem>>, vector<2x128xf32>
    tpu.vector_store %arg6[%c0_24, %c0_25], %24 {strides = array<i32>} : memref<2x128xf32, #tpu.memory_space<vmem>>, vector<2x128xf32>,
    %c3_i32 = arith.constant 3 : i32
    %40 = arith.cmpi eq, %arg1, %c3_i32 : i32
    %41 = arith.extui %40 : i1 to i32
    %c0_i32_26 = arith.constant 0 : i32
    %42 = arith.cmpi ne, %41, %c0_i32_26 : i32
    scf.if %42 {
      %c0_27 = arith.constant 0 : index
      %c0_28 = arith.constant 0 : index
      %43 = vector.load %arg8[%c0_27, %c0_28] : memref<2x128xf32, #tpu.memory_space<vmem>>, vector<2x128xf32>
      %c0_29 = arith.constant 0 : index
      %c0_30 = arith.constant 0 : index
      %44 = vector.load %arg7[%c0_29, %c0_30] : memref<2x128xf32, #tpu.memory_space<vmem>>, vector<2x128xf32>
      %45 = tpu.reciprocal %44 : vector<2x128xf32> -> vector<2x128xf32>
      %46 = arith.mulf %43, %45 : vector<2x128xf32>
      %c0_31 = arith.constant 0 : index
      %c0_32 = arith.constant 0 : index
      %47 = vector.load %arg5[%c0_31, %c0_32] : memref<2x128xf32, #tpu.memory_space<vmem>>, vector<2x128xf32>
      tpu.vector_store %arg5[%c0_31, %c0_32], %46 {strides = array<i32>} : memref<2x128xf32, #tpu.memory_space<vmem>>, vector<2x128xf32>,
    } else {
    }
    return
  }
  func.func @transform_0(%arg0: i32, %arg1: i32) -> (i32, i32, i32) {
    %c0_i32 = arith.constant 0 : i32
    %c0_i32_0 = arith.constant 0 : i32
    %c0_i32_1 = arith.constant 0 : i32
    return %arg1, %c0_i32, %c0_i32_0 : i32, i32, i32
  }
  func.func @transform_1(%arg0: i32, %arg1: i32) -> (i32, i32, i32) {
    %c0_i32 = arith.constant 0 : i32
    %c0_i32_0 = arith.constant 0 : i32
    %c0_i32_1 = arith.constant 0 : i32
    return %arg0, %c0_i32, %c0_i32_0 : i32, i32, i32
  }
  func.func @transform_2(%arg0: i32, %arg1: i32) -> (i32, i32, i32) {
    %c0_i32 = arith.constant 0 : i32
    %c0_i32_0 = arith.constant 0 : i32
    %c0_i32_1 = arith.constant 0 : i32
    return %arg0, %c0_i32, %c0_i32_0 : i32, i32, i32
  }
  func.func @transform_3(%arg0: i32, %arg1: i32) -> (i32, i32) {
    %c0_i32 = arith.constant 0 : i32
    %c0_i32_0 = arith.constant 0 : i32
    return %c0_i32, %arg0 : i32, i32
  }
}

module attributes {stable_mosaic.version = 11 : i64} {
  func.func @gru_kernel(%arg0: i32, %arg1: memref<4x2x48xf32, #tpu.memory_space<vmem>>, %arg2: memref<4x2x48xf32, #tpu.memory_space<vmem>>, %arg3: memref<16x48xf32, #tpu.memory_space<vmem>>, %arg4: memref<1x48xf32, #tpu.memory_space<vmem>>, %arg5: memref<16x48xf32, #tpu.memory_space<vmem>>, %arg6: memref<1x48xf32, #tpu.memory_space<vmem>>, %arg7: memref<4x2x16xf32, #tpu.memory_space<vmem>>, %arg8: memref<4x2x16xf32, #tpu.memory_space<vmem>>, %arg9: memref<2x16xf32, #tpu.memory_space<vmem>>, %arg10: memref<2x16xf32, #tpu.memory_space<vmem>>) attributes {dimension_semantics = [#tpu.dimension_semantics<arbitrary>], iteration_bounds = array<i64: 1>, scalar_prefetch = 0 : i64, scratch_operands = 2 : i64, tpu.core_type = #tpu.core_type<tc>, window_params = [{pipeline_mode = #tpu.pipeline_mode<synchronous>, transform_indices = @transform_0, window_bounds = array<i64: 4, 2, 48>}, {pipeline_mode = #tpu.pipeline_mode<synchronous>, transform_indices = @transform_1, window_bounds = array<i64: 4, 2, 48>}, {pipeline_mode = #tpu.pipeline_mode<synchronous>, transform_indices = @transform_2, window_bounds = array<i64: 16, 48>}, {pipeline_mode = #tpu.pipeline_mode<synchronous>, transform_indices = @transform_3, window_bounds = array<i64: 1, 48>}, {pipeline_mode = #tpu.pipeline_mode<synchronous>, transform_indices = @transform_4, window_bounds = array<i64: 16, 48>}, {pipeline_mode = #tpu.pipeline_mode<synchronous>, transform_indices = @transform_5, window_bounds = array<i64: 1, 48>}, {pipeline_mode = #tpu.pipeline_mode<synchronous>, transform_indices = @transform_6, window_bounds = array<i64: 4, 2, 16>}, {pipeline_mode = #tpu.pipeline_mode<synchronous>, transform_indices = @transform_7, window_bounds = array<i64: 4, 2, 16>}]} {
    %cst = arith.constant 0.000000e+00 : f32
    %0 = vector.broadcast %cst : f32 to vector<2x16xf32>
    %c0 = arith.constant 0 : index
    %c0_0 = arith.constant 0 : index
    %1 = vector.load %arg9[%c0, %c0_0] : memref<2x16xf32, #tpu.memory_space<vmem>>, vector<2x16xf32>
    tpu.vector_store %arg9[%c0, %c0_0], %0 {strides = array<i32>} : memref<2x16xf32, #tpu.memory_space<vmem>>, vector<2x16xf32>,
    %cst_1 = arith.constant 0.000000e+00 : f32
    %2 = vector.broadcast %cst_1 : f32 to vector<2x16xf32>
    %c0_2 = arith.constant 0 : index
    %c0_3 = arith.constant 0 : index
    %3 = vector.load %arg10[%c0_2, %c0_3] : memref<2x16xf32, #tpu.memory_space<vmem>>, vector<2x16xf32>
    tpu.vector_store %arg10[%c0_2, %c0_3], %2 {strides = array<i32>} : memref<2x16xf32, #tpu.memory_space<vmem>>, vector<2x16xf32>,
    %c0_4 = arith.constant 0 : index
    %c0_5 = arith.constant 0 : index
    %4 = vector.load %arg3[%c0_4, %c0_5] : memref<16x48xf32, #tpu.memory_space<vmem>>, vector<16x48xf32>
    %c0_6 = arith.constant 0 : index
    %c0_7 = arith.constant 0 : index
    %5 = vector.load %arg4[%c0_6, %c0_7] : memref<1x48xf32, #tpu.memory_space<vmem>>, vector<1x48xf32>
    %c0_8 = arith.constant 0 : index
    %c0_9 = arith.constant 0 : index
    %6 = vector.load %arg5[%c0_8, %c0_9] : memref<16x48xf32, #tpu.memory_space<vmem>>, vector<16x48xf32>
    %c0_10 = arith.constant 0 : index
    %c0_11 = arith.constant 0 : index
    %7 = vector.load %arg6[%c0_10, %c0_11] : memref<1x48xf32, #tpu.memory_space<vmem>>, vector<1x48xf32>
    %c0_i32 = arith.constant 0 : i32
    %c4_i32 = arith.constant 4 : i32
    %8 = arith.addi %c0_i32, %c4_i32 : i32
    %c1_i32 = arith.constant 1 : i32
    scf.for %arg11 = %c0_i32 to %8 step %c1_i32  : i32 {
      %c1_i32_13 = arith.constant 1 : i32
      %9 = arith.muli %arg11, %c1_i32_13 : i32
      %c0_i32_14 = arith.constant 0 : i32
      %10 = arith.addi %c0_i32_14, %9 : i32
      %c3_i32 = arith.constant 3 : i32
      %11 = arith.subi %c3_i32, %10 : i32
      %12 = arith.index_cast %10 : i32 to index
      %c0_15 = arith.constant 0 : index
      %c0_16 = arith.constant 0 : index
      %13 = vector.load %arg1[%12, %c0_15, %c0_16] : memref<4x2x48xf32, #tpu.memory_space<vmem>>, vector<1x2x48xf32>
      %14 = vector.shape_cast %13 : vector<1x2x48xf32> to vector<2x48xf32>
      %15 = arith.index_cast %11 : i32 to index
      %c0_17 = arith.constant 0 : index
      %c0_18 = arith.constant 0 : index
      %16 = vector.load %arg2[%15, %c0_17, %c0_18] : memref<4x2x48xf32, #tpu.memory_space<vmem>>, vector<1x2x48xf32>
      %17 = vector.shape_cast %16 : vector<1x2x48xf32> to vector<2x48xf32>
      %c0_19 = arith.constant 0 : index
      %c0_20 = arith.constant 0 : index
      %18 = vector.load %arg9[%c0_19, %c0_20] : memref<2x16xf32, #tpu.memory_space<vmem>>, vector<2x16xf32>
      %c0_21 = arith.constant 0 : index
      %c0_22 = arith.constant 0 : index
      %19 = vector.load %arg10[%c0_21, %c0_22] : memref<2x16xf32, #tpu.memory_space<vmem>>, vector<2x16xf32>
      %cst_23 = arith.constant dense<0.000000e+00> : vector<2x48xf32>
      %20 = tpu.matmul %18, %4, %cst_23 {dimension_numbers = #tpu.dot_dimension_numbers<[1], [0], [0], [1], [0, 0, 1, 1], [], []>} : vector<2x16xf32>, vector<16x48xf32>, vector<2x48xf32> -> vector<2x48xf32>
      %21 = vector.broadcast %5 : vector<1x48xf32> to vector<2x48xf32>
      %22 = arith.addf %20, %21 : vector<2x48xf32>
      %cst_24 = arith.constant dense<0.000000e+00> : vector<2x48xf32>
      %23 = tpu.matmul %19, %6, %cst_24 {dimension_numbers = #tpu.dot_dimension_numbers<[1], [0], [0], [1], [0, 0, 1, 1], [], []>} : vector<2x16xf32>, vector<16x48xf32>, vector<2x48xf32> -> vector<2x48xf32>
      %24 = vector.broadcast %7 : vector<1x48xf32> to vector<2x48xf32>
      %25 = arith.addf %23, %24 : vector<2x48xf32>
      %26 = vector.extract_strided_slice %14 {offsets = [0, 0], sizes = [2, 16], strides = [1, 1]} : vector<2x48xf32> to vector<2x16xf32>
      %27 = vector.extract_strided_slice %22 {offsets = [0, 0], sizes = [2, 16], strides = [1, 1]} : vector<2x48xf32> to vector<2x16xf32>
      %28 = arith.addf %26, %27 : vector<2x16xf32>
      %29 = arith.negf %28 : vector<2x16xf32>
      %30 = math.exp %29 : vector<2x16xf32>
      %cst_25 = arith.constant 1.000000e+00 : f32
      %31 = vector.broadcast %cst_25 : f32 to vector<2x16xf32>
      %32 = arith.addf %31, %30 : vector<2x16xf32>
      %33 = arith.divf %31, %32 : vector<2x16xf32>
      %34 = vector.extract_strided_slice %14 {offsets = [0, 16], sizes = [2, 16], strides = [1, 1]} : vector<2x48xf32> to vector<2x16xf32>
      %35 = vector.extract_strided_slice %22 {offsets = [0, 16], sizes = [2, 16], strides = [1, 1]} : vector<2x48xf32> to vector<2x16xf32>
      %36 = arith.addf %34, %35 : vector<2x16xf32>
      %37 = arith.negf %36 : vector<2x16xf32>
      %38 = math.exp %37 : vector<2x16xf32>
      %cst_26 = arith.constant 1.000000e+00 : f32
      %39 = vector.broadcast %cst_26 : f32 to vector<2x16xf32>
      %40 = arith.addf %39, %38 : vector<2x16xf32>
      %41 = arith.divf %39, %40 : vector<2x16xf32>
      %42 = vector.extract_strided_slice %14 {offsets = [0, 32], sizes = [2, 16], strides = [1, 1]} : vector<2x48xf32> to vector<2x16xf32>
      %43 = vector.extract_strided_slice %22 {offsets = [0, 32], sizes = [2, 16], strides = [1, 1]} : vector<2x48xf32> to vector<2x16xf32>
      %44 = arith.mulf %33, %43 : vector<2x16xf32>
      %45 = arith.addf %42, %44 : vector<2x16xf32>
      %46 = math.tanh %45 : vector<2x16xf32>
      %cst_27 = arith.constant 1.000000e+00 : f32
      %47 = vector.broadcast %cst_27 : f32 to vector<2x16xf32>
      %48 = arith.subf %47, %41 : vector<2x16xf32>
      %49 = arith.mulf %48, %46 : vector<2x16xf32>
      %50 = arith.mulf %41, %18 : vector<2x16xf32>
      %51 = arith.addf %49, %50 : vector<2x16xf32>
      %52 = vector.extract_strided_slice %17 {offsets = [0, 0], sizes = [2, 16], strides = [1, 1]} : vector<2x48xf32> to vector<2x16xf32>
      %53 = vector.extract_strided_slice %25 {offsets = [0, 0], sizes = [2, 16], strides = [1, 1]} : vector<2x48xf32> to vector<2x16xf32>
      %54 = arith.addf %52, %53 : vector<2x16xf32>
      %55 = arith.negf %54 : vector<2x16xf32>
      %56 = math.exp %55 : vector<2x16xf32>
      %cst_28 = arith.constant 1.000000e+00 : f32
      %57 = vector.broadcast %cst_28 : f32 to vector<2x16xf32>
      %58 = arith.addf %57, %56 : vector<2x16xf32>
      %59 = arith.divf %57, %58 : vector<2x16xf32>
      %60 = vector.extract_strided_slice %17 {offsets = [0, 16], sizes = [2, 16], strides = [1, 1]} : vector<2x48xf32> to vector<2x16xf32>
      %61 = vector.extract_strided_slice %25 {offsets = [0, 16], sizes = [2, 16], strides = [1, 1]} : vector<2x48xf32> to vector<2x16xf32>
      %62 = arith.addf %60, %61 : vector<2x16xf32>
      %63 = arith.negf %62 : vector<2x16xf32>
      %64 = math.exp %63 : vector<2x16xf32>
      %cst_29 = arith.constant 1.000000e+00 : f32
      %65 = vector.broadcast %cst_29 : f32 to vector<2x16xf32>
      %66 = arith.addf %65, %64 : vector<2x16xf32>
      %67 = arith.divf %65, %66 : vector<2x16xf32>
      %68 = vector.extract_strided_slice %17 {offsets = [0, 32], sizes = [2, 16], strides = [1, 1]} : vector<2x48xf32> to vector<2x16xf32>
      %69 = vector.extract_strided_slice %25 {offsets = [0, 32], sizes = [2, 16], strides = [1, 1]} : vector<2x48xf32> to vector<2x16xf32>
      %70 = arith.mulf %59, %69 : vector<2x16xf32>
      %71 = arith.addf %68, %70 : vector<2x16xf32>
      %72 = math.tanh %71 : vector<2x16xf32>
      %cst_30 = arith.constant 1.000000e+00 : f32
      %73 = vector.broadcast %cst_30 : f32 to vector<2x16xf32>
      %74 = arith.subf %73, %67 : vector<2x16xf32>
      %75 = arith.mulf %74, %72 : vector<2x16xf32>
      %76 = arith.mulf %67, %19 : vector<2x16xf32>
      %77 = arith.addf %75, %76 : vector<2x16xf32>
      %c0_31 = arith.constant 0 : index
      %c0_32 = arith.constant 0 : index
      %78 = vector.load %arg9[%c0_31, %c0_32] : memref<2x16xf32, #tpu.memory_space<vmem>>, vector<2x16xf32>
      tpu.vector_store %arg9[%c0_31, %c0_32], %51 {strides = array<i32>} : memref<2x16xf32, #tpu.memory_space<vmem>>, vector<2x16xf32>,
      %c0_33 = arith.constant 0 : index
      %c0_34 = arith.constant 0 : index
      %79 = vector.load %arg10[%c0_33, %c0_34] : memref<2x16xf32, #tpu.memory_space<vmem>>, vector<2x16xf32>
      tpu.vector_store %arg10[%c0_33, %c0_34], %77 {strides = array<i32>} : memref<2x16xf32, #tpu.memory_space<vmem>>, vector<2x16xf32>,
      %80 = arith.index_cast %10 : i32 to index
      %c0_35 = arith.constant 0 : index
      %c0_36 = arith.constant 0 : index
      %81 = vector.load %arg7[%80, %c0_35, %c0_36] : memref<4x2x16xf32, #tpu.memory_space<vmem>>, vector<1x2x16xf32>
      %82 = vector.shape_cast %81 : vector<1x2x16xf32> to vector<2x16xf32>
      %83 = vector.shape_cast %51 : vector<2x16xf32> to vector<1x2x16xf32>
      tpu.vector_store %arg7[%80, %c0_35, %c0_36], %83 {strides = array<i32>} : memref<4x2x16xf32, #tpu.memory_space<vmem>>, vector<1x2x16xf32>,
      %84 = arith.index_cast %11 : i32 to index
      %c0_37 = arith.constant 0 : index
      %c0_38 = arith.constant 0 : index
      %85 = vector.load %arg8[%84, %c0_37, %c0_38] : memref<4x2x16xf32, #tpu.memory_space<vmem>>, vector<1x2x16xf32>
      %86 = vector.shape_cast %85 : vector<1x2x16xf32> to vector<2x16xf32>
      %87 = vector.shape_cast %77 : vector<2x16xf32> to vector<1x2x16xf32>
      tpu.vector_store %arg8[%84, %c0_37, %c0_38], %87 {strides = array<i32>} : memref<4x2x16xf32, #tpu.memory_space<vmem>>, vector<1x2x16xf32>,
    }
    %c4_i32_12 = arith.constant 4 : i32
    return
  }
  func.func @transform_0(%arg0: i32) -> (i32, i32, i32) {
    %c0_i32 = arith.constant 0 : i32
    %c0_i32_0 = arith.constant 0 : i32
    %c0_i32_1 = arith.constant 0 : i32
    %c0_i32_2 = arith.constant 0 : i32
    return %c0_i32, %c0_i32_0, %c0_i32_1 : i32, i32, i32
  }
  func.func @transform_1(%arg0: i32) -> (i32, i32, i32) {
    %c0_i32 = arith.constant 0 : i32
    %c0_i32_0 = arith.constant 0 : i32
    %c0_i32_1 = arith.constant 0 : i32
    %c0_i32_2 = arith.constant 0 : i32
    return %c0_i32, %c0_i32_0, %c0_i32_1 : i32, i32, i32
  }
  func.func @transform_2(%arg0: i32) -> (i32, i32) {
    %c0_i32 = arith.constant 0 : i32
    %c0_i32_0 = arith.constant 0 : i32
    %c0_i32_1 = arith.constant 0 : i32
    return %c0_i32, %c0_i32_0 : i32, i32
  }
  func.func @transform_3(%arg0: i32) -> (i32, i32) {
    %c0_i32 = arith.constant 0 : i32
    %c0_i32_0 = arith.constant 0 : i32
    %c0_i32_1 = arith.constant 0 : i32
    return %c0_i32, %c0_i32_0 : i32, i32
  }
  func.func @transform_4(%arg0: i32) -> (i32, i32) {
    %c0_i32 = arith.constant 0 : i32
    %c0_i32_0 = arith.constant 0 : i32
    %c0_i32_1 = arith.constant 0 : i32
    return %c0_i32, %c0_i32_0 : i32, i32
  }
  func.func @transform_5(%arg0: i32) -> (i32, i32) {
    %c0_i32 = arith.constant 0 : i32
    %c0_i32_0 = arith.constant 0 : i32
    %c0_i32_1 = arith.constant 0 : i32
    return %c0_i32, %c0_i32_0 : i32, i32
  }
  func.func @transform_6(%arg0: i32) -> (i32, i32, i32) {
    %c0_i32 = arith.constant 0 : i32
    %c0_i32_0 = arith.constant 0 : i32
    %c0_i32_1 = arith.constant 0 : i32
    %c0_i32_2 = arith.constant 0 : i32
    return %c0_i32, %c0_i32_0, %c0_i32_1 : i32, i32, i32
  }
  func.func @transform_7(%arg0: i32) -> (i32, i32, i32) {
    %c0_i32 = arith.constant 0 : i32
    %c0_i32_0 = arith.constant 0 : i32
    %c0_i32_1 = arith.constant 0 : i32
    %c0_i32_2 = arith.constant 0 : i32
    return %c0_i32, %c0_i32_0, %c0_i32_1 : i32, i32, i32
  }
}

module attributes {stable_mosaic.version = 11 : i64} {
  func.func @dense_bias_kernel(%arg0: i32, %arg1: memref<8x32xf32, #tpu.memory_space<vmem>>, %arg2: memref<32x96xf32, #tpu.memory_space<vmem>>, %arg3: memref<1x96xf32, #tpu.memory_space<vmem>>, %arg4: memref<8x96xf32, #tpu.memory_space<vmem>>) attributes {dimension_semantics = [#tpu.dimension_semantics<parallel>], iteration_bounds = array<i64: 1>, scalar_prefetch = 0 : i64, scratch_operands = 0 : i64, tpu.core_type = #tpu.core_type<tc>, window_params = [{transform_indices = @transform_0, window_bounds = array<i64: 8, 32>}, {pipeline_mode = #tpu.pipeline_mode<synchronous>, transform_indices = @transform_1, window_bounds = array<i64: 32, 96>}, {pipeline_mode = #tpu.pipeline_mode<synchronous>, transform_indices = @transform_2, window_bounds = array<i64: 1, 96>}, {transform_indices = @transform_3, window_bounds = array<i64: 8, 96>}]} {
    %c0 = arith.constant 0 : index
    %c0_0 = arith.constant 0 : index
    %0 = vector.load %arg1[%c0, %c0_0] : memref<8x32xf32, #tpu.memory_space<vmem>>, vector<8x32xf32>
    %c0_1 = arith.constant 0 : index
    %c0_2 = arith.constant 0 : index
    %1 = vector.load %arg2[%c0_1, %c0_2] : memref<32x96xf32, #tpu.memory_space<vmem>>, vector<32x96xf32>
    %cst = arith.constant dense<0.000000e+00> : vector<8x96xf32>
    %2 = tpu.matmul %0, %1, %cst {dimension_numbers = #tpu.dot_dimension_numbers<[1], [0], [0], [1], [0, 0, 1, 1], [], []>} : vector<8x32xf32>, vector<32x96xf32>, vector<8x96xf32> -> vector<8x96xf32>
    %c0_3 = arith.constant 0 : index
    %c0_4 = arith.constant 0 : index
    %3 = vector.load %arg3[%c0_3, %c0_4] : memref<1x96xf32, #tpu.memory_space<vmem>>, vector<1x96xf32>
    %4 = vector.broadcast %3 : vector<1x96xf32> to vector<8x96xf32>
    %5 = arith.addf %2, %4 : vector<8x96xf32>
    %c0_5 = arith.constant 0 : index
    %c0_6 = arith.constant 0 : index
    %6 = vector.load %arg4[%c0_5, %c0_6] : memref<8x96xf32, #tpu.memory_space<vmem>>, vector<8x96xf32>
    tpu.vector_store %arg4[%c0_5, %c0_6], %5 {strides = array<i32>} : memref<8x96xf32, #tpu.memory_space<vmem>>, vector<8x96xf32>,
    return
  }
  func.func @transform_0(%arg0: i32) -> (i32, i32) {
    %c0_i32 = arith.constant 0 : i32
    %c0_i32_0 = arith.constant 0 : i32
    return %arg0, %c0_i32 : i32, i32
  }
  func.func @transform_1(%arg0: i32) -> (i32, i32) {
    %c0_i32 = arith.constant 0 : i32
    %c0_i32_0 = arith.constant 0 : i32
    %c0_i32_1 = arith.constant 0 : i32
    return %c0_i32, %c0_i32_0 : i32, i32
  }
  func.func @transform_2(%arg0: i32) -> (i32, i32) {
    %c0_i32 = arith.constant 0 : i32
    %c0_i32_0 = arith.constant 0 : i32
    %c0_i32_1 = arith.constant 0 : i32
    return %c0_i32, %c0_i32_0 : i32, i32
  }
  func.func @transform_3(%arg0: i32) -> (i32, i32) {
    %c0_i32 = arith.constant 0 : i32
    %c0_i32_0 = arith.constant 0 : i32
    return %arg0, %c0_i32 : i32, i32
  }
}

</mosaic_0001>

<bundles_post_ra>
// kernel: _lambda_.7
= control target key start
LH: loop header
LB: loop body
LE: loop exit
PB: predicated region body
PF: predicated region fallthrough
CT: control target
= control target key end

     0   :  { %s839_s12 = smov 0   ;;  %s1038_s0 = inlined_call_operand.vmem [shape: f32[1,512,9], index: 0, kind: input, shape index: {}]   ;;  %s1039_s1 = inlined_call_operand.vmem [shape: f32[9,4], index: 1, kind: input, shape index: {}]   ;;  %s1040_s2 = inlined_call_operand.vmem [shape: f32[1,4], index: 2, kind: input, shape index: {}]   ;;  %s1041_s3 = inlined_call_operand.vmem [shape: f32[512,4], index: 3, kind: output, shape index: {}]  }
   0x1 LB: > { %s662_s13 = sadd.s32 4294967295, %s816_s12   ;;  %p666_p0 = scmp.ge.s32.totalorder %s816_s12, 1  ;;  %s816_s12 = sphi %s839_s12, %s13_s12  }
   0x2   : > { %p138_p1 = scmp.lt.s32.totalorder %s816_s12, 3 }
   0x4   : > { %p139_p2 = pnand %p666_p0, %p138_p1 }
   0x5   : > { %v206_v0 = vld [vmem:[%s1039_s1] sm:$0xff] (!%p139_p2)  ;;  %v207_v1 = vld [vmem:[%s1039_s1 + $0x8] sm:$0x1] (!%p139_p2)  ;;  %vm312_vm0 = vcmask (!%p139_p2), 1040384   ;;  %s667_s18 = sshll.u32 (!%p139_p2), %s662_s13, 5  ;;  %vm818_vm1 = vmmov (!%p139_p2), 1  }
   0x6   : > { %142 = sbr.rel (%p139_p2) target bundleno = 265 (0x109), region = 32  ;;  %v793_v2 = vpack.c.bf16 (!%p139_p2), %v207_v1, %v206_v0  ;;  %vm794_vm2 = vmpackc.low (!%p139_p2), %vm312_vm0, %vm818_vm1  ;;  %p163_p3 = scmp.lt.s32.totalorder (!%p139_p2), %s667_s18, 63  ;;  %vm215_vm3 = vcmask (!%p139_p2), 72704   ;;  %v930_v35 = vld [vmem:[%s1040_s2] ss:$0 sm:$0xff] (!%p139_p2)  ;;  %vm573_vm4 = vcmask (!%p139_p2), 31744  }
   0x8   : > { %795 = vmatprep.subr.msk.bf16.mxu0 (!%p139_p2), %vm794_vm2, %v793_v2  ;;  %799 = vmatprep.subr.msk.bf16.mxu1 (!%p139_p2), %vm794_vm2, %v793_v2 }
   0x9   : > { %798 = vmatpush3.bf16.msk.msra.mxu0 (!%p139_p2), %vm794_vm2, %v793_v2  ;;  %800 = vmatpush3.bf16.msk.msra.mxu1 (!%p139_p2), %vm794_vm2, %v793_v2 }
   0xd   : > { %s1043_s18 = smov (!%p163_p3, %s667_s18), 63 }
   0xe   : > { %s668_s19 = sshll.u32 %s1043_s18, 3 }
   0xf   : > { %s861_s22 = scalar_lea.vmem %s1038_s0, %s668_s19  ;;  %s939_s27 = scalar_lea.vmem %s1041_s3, %s668_s19 }
  0x10   : > { %v174_v3 = vld [vmem:[%s861_s22] sm:$0xff]  ;;  %v175_v5 = vld [vmem:[%s861_s22 + $0x8] sm:$0xff]  ;;  %v176_v7 = vld [vmem:[%s861_s22 + $0x10] sm:$0xff] }
  0x11   : > { %v190_v4 = vld [vmem:[%s861_s22 + $0x80] sm:$0xff]  ;;  %745 = vmatprep.mubr.msk.f32.mxu0 %vm215_vm3, %v174_v3  ;;  %v191_v6 = vld [vmem:[%s861_s22 + $0x88] sm:$0xff]  ;;  %v192_v8 = vld [vmem:[%s861_s22 + $0x90] sm:$0xff] }
  0x12   : > { %769 = vmatprep.mubr.msk.f32.mxu1 %vm215_vm3, %v190_v4  ;;  %746 = vmatmul.mubr.msk.f32.vlgmr.msra.gmra.mrb[0].mxu0 %vm215_vm3, %v175_v5  ;;  %v177_v9 = vld [vmem:[%s861_s22 + $0x18] sm:$0xff]  ;;  %v178_v11 = vld [vmem:[%s861_s22 + $0x20] sm:$0xff]  ;;  %v179_v13 = vld [vmem:[%s861_s22 + $0x28] sm:$0xff] }
  0x13   : > { %770 = vmatmul.mubr.msk.f32.vlgmr.msra.gmra.mrb[0].mxu1 %vm215_vm3, %v191_v6  ;;  %748 = vmatprep.mubr.msk.f32.mxu0 %vm215_vm3, %v176_v7  ;;  %v193_v10 = vld [vmem:[%s861_s22 + $0x98] sm:$0xff]  ;;  %v194_v12 = vld [vmem:[%s861_s22 + $0xa0] sm:$0xff]  ;;  %v195_v14 = vld [vmem:[%s861_s22 + $0xa8] sm:$0xff] }
  0x14   : > { %772 = vmatprep.mubr.msk.f32.mxu1 %vm215_vm3, %v192_v8  ;;  %v180_v15 = vld [vmem:[%s861_s22 + $0x30] sm:$0xff]  ;;  %v181_v17 = vld [vmem:[%s861_s22 + $0x38] sm:$0xff]  ;;  %v182_v19 = vld [vmem:[%s861_s22 + $0x40] sm:$0xff] }
  0x15   : > { %v196_v16 = vld [vmem:[%s861_s22 + $0xb0] sm:$0xff]  ;;  %v197_v18 = vld [vmem:[%s861_s22 + $0xb8] sm:$0xff]  ;;  %v198_v20 = vld [vmem:[%s861_s22 + $0xc0] sm:$0xff] }
  0x16   : > { %749 = vmatmul.mubr.msk.f32.gmra.mrb[2].mxu0 %vm215_vm3, %v177_v9  ;;  %v183_v21 = vld [vmem:[%s861_s22 + $0x48] sm:$0xff]  ;;  %v184_v23 = vld [vmem:[%s861_s22 + $0x50] sm:$0xff]  ;;  %v185_v25 = vld [vmem:[%s861_s22 + $0x58] sm:$0xff] }
  0x17   : > { %773 = vmatmul.mubr.msk.f32.gmra.mrb[2].mxu1 %vm215_vm3, %v193_v10  ;;  %751 = vmatprep.mubr.msk.f32.mxu0 %vm215_vm3, %v178_v11  ;;  %v199_v22 = vld [vmem:[%s861_s22 + $0xc8] sm:$0xff]  ;;  %v200_v24 = vld [vmem:[%s861_s22 + $0xd0] sm:$0xff]  ;;  %v201_v26 = vld [vmem:[%s861_s22 + $0xd8] sm:$0xff] }
  0x18   : > { %775 = vmatprep.mubr.msk.f32.mxu1 %vm215_vm3, %v194_v12  ;;  %v186_v27 = vld [vmem:[%s861_s22 + $0x60] sm:$0xff]  ;;  %v187_v29 = vld [vmem:[%s861_s22 + $0x68] sm:$0xff]  ;;  %v188_v31 = vld [vmem:[%s861_s22 + $0x70] sm:$0xff] }
  0x19   : > { %v202_v28 = vld [vmem:[%s861_s22 + $0xe0] sm:$0xff]  ;;  %v203_v30 = vld [vmem:[%s861_s22 + $0xe8] sm:$0xff]  ;;  %v204_v32 = vld [vmem:[%s861_s22 + $0xf0] sm:$0xff] }
  0x1a   : > { %752 = vmatmul.mubr.msk.f32.gmra.mrb[4].mxu0 %vm215_vm3, %v179_v13  ;;  %v189_v33 = vld [vmem:[%s861_s22 + $0x78] sm:$0xff] }
  0x1b   : > { %776 = vmatmul.mubr.msk.f32.gmra.mrb[4].mxu1 %vm215_vm3, %v195_v14  ;;  %754 = vmatprep.mubr.msk.f32.mxu0 %vm215_vm3, %v180_v15  ;;  %v205_v34 = vld [vmem:[%s861_s22 + $0xf8] sm:$0xff] }
  0x1c   : > { %778 = vmatprep.mubr.msk.f32.mxu1 %vm215_vm3, %v196_v16 }
  0x1e   : > { %755 = vmatmul.mubr.msk.f32.gmra.mrb[6].mxu0 %vm215_vm3, %v181_v17 }
  0x1f   : > { %779 = vmatmul.mubr.msk.f32.gmra.mrb[6].mxu1 %vm215_vm3, %v197_v18  ;;  %757 = vmatprep.mubr.msk.f32.mxu0 %vm215_vm3, %v182_v19 }
  0x20   : > { %781 = vmatprep.mubr.msk.f32.mxu1 %vm215_vm3, %v198_v20 }
  0x22   : > { %758 = vmatmul.mubr.msk.f32.gmra.mrb[8].mxu0 %vm215_vm3, %v183_v21 }
  0x23   : > { %782 = vmatmul.mubr.msk.f32.gmra.mrb[8].mxu1 %vm215_vm3, %v199_v22  ;;  %760 = vmatprep.mubr.msk.f32.mxu0 %vm215_vm3, %v184_v23 }
  0x24   : > { %784 = vmatprep.mubr.msk.f32.mxu1 %vm215_vm3, %v200_v24 }
  0x26   : > { %761 = vmatmul.mubr.msk.f32.gmra.mrb[10].mxu0 %vm215_vm3, %v185_v25 }
  0x27   : > { %785 = vmatmul.mubr.msk.f32.gmra.mrb[10].mxu1 %vm215_vm3, %v201_v26  ;;  %763 = vmatprep.mubr.msk.f32.mxu0 %vm215_vm3, %v186_v27 }
  0x28   : > { %787 = vmatprep.mubr.msk.f32.mxu1 %vm215_vm3, %v202_v28 }
  0x2a   : > { %764 = vmatmul.mubr.msk.f32.gmra.mrb[12].mxu0 %vm215_vm3, %v187_v29 }
  0x2b   : > { %788 = vmatmul.mubr.msk.f32.gmra.mrb[12].mxu1 %vm215_vm3, %v203_v30  ;;  %766 = vmatprep.mubr.msk.f32.mxu0 %vm215_vm3, %v188_v31 }
  0x2c   : > { %790 = vmatprep.mubr.msk.f32.mxu1 %vm215_vm3, %v204_v32 }
  0x2e   : > { %767 = vmatmul.mubr.msk.f32.gmra.mrb[14].mxu0 %vm215_vm3, %v189_v33 }
  0x2f   : > { %791 = vmatmul.mubr.msk.f32.gmra.mrb[14].mxu1 %vm215_vm3, %v205_v34 }
  0xe5   : > { %v747_v36 = vpop.f32.mrb[0].mxu0 }
  0xe6   : > { %v771_v37 = vpop.f32.mrb[0].mxu1  ;;  %v388_v38 = vadd.f32 %v747_v36, %v930_v35  ;;  %v382_v40 = vpop.f32.mrb[1].mxu0 }
  0xe7   : > { %v468_v39 = vadd.f32 %v771_v37, %v930_v35  ;;  %v462_v41 = vpop.f32.mrb[1].mxu1  ;;  %v383_v42 = vadd.f32 %v930_v35, %v382_v40 }
  0xe8   : > { %v463_v43 = vadd.f32 %v930_v35, %v462_v41  ;;  %v542_v44 = vmax.f32 %v388_v38, 0.0 }
  0xe9   : > { %v558_v45 = vmax.f32 %v468_v39, 0.0  ;;  %v541_v46 = vmax.f32 %v383_v42, 0.0  ;;  %v750_v48 = vpop.f32.mrb[2].mxu0 }
  0xea   : > { %v557_v47 = vmax.f32 %v463_v43, 0.0  ;;  %v774_v49 = vpop.f32.mrb[2].mxu1  ;;  %575 = vst.msk [vmem:[%s939_s27 + $0x8] sm:$0xff] %vm573_vm4, %v542_v44  ;;  %v398_v50 = vadd.f32 %v750_v48, %v930_v35  ;;  %v392_v52 = vpop.f32.mrb[3].mxu0 }
  0xeb   : > { %591 = vst.msk [vmem:[%s939_s27 + $0x88] sm:$0xff] %vm573_vm4, %v558_v45  ;;  %v478_v51 = vadd.f32 %v774_v49, %v930_v35  ;;  %v472_v53 = vpop.f32.mrb[3].mxu1  ;;  %574 = vst.msk [vmem:[%s939_s27] sm:$0xff] %vm573_vm4, %v541_v46  ;;  %v393_v54 = vadd.f32 %v930_v35, %v392_v52 }
  0xec   : > { %590 = vst.msk [vmem:[%s939_s27 + $0x80] sm:$0xff] %vm573_vm4, %v557_v47  ;;  %v473_v55 = vadd.f32 %v930_v35, %v472_v53  ;;  %v544_v56 = vmax.f32 %v398_v50, 0.0 }
  0xed   : > { %v560_v57 = vmax.f32 %v478_v51, 0.0  ;;  %v543_v58 = vmax.f32 %v393_v54, 0.0  ;;  %v753_v60 = vpop.f32.mrb[4].mxu0 }
  0xee   : > { %v559_v59 = vmax.f32 %v473_v55, 0.0  ;;  %v777_v61 = vpop.f32.mrb[4].mxu1  ;;  %577 = vst.msk [vmem:[%s939_s27 + $0x18] sm:$0xff] %vm573_vm4, %v544_v56  ;;  %v408_v62 = vadd.f32 %v753_v60, %v930_v35  ;;  %v402_v0 = vpop.f32.mrb[5].mxu0 }
  0xef   : > { %593 = vst.msk [vmem:[%s939_s27 + $0x98] sm:$0xff] %vm573_vm4, %v560_v57  ;;  %v488_v63 = vadd.f32 %v777_v61, %v930_v35  ;;  %v482_v1 = vpop.f32.mrb[5].mxu1  ;;  %576 = vst.msk [vmem:[%s939_s27 + $0x10] sm:$0xff] %vm573_vm4, %v543_v58  ;;  %v403_v2 = vadd.f32 %v930_v35, %v402_v0 }
  0xf0   : > { %592 = vst.msk [vmem:[%s939_s27 + $0x90] sm:$0xff] %vm573_vm4, %v559_v59  ;;  %v483_v3 = vadd.f32 %v930_v35, %v482_v1  ;;  %v546_v4 = vmax.f32 %v408_v62, 0.0 }
  0xf1   : > { %v562_v5 = vmax.f32 %v488_v63, 0.0  ;;  %v545_v6 = vmax.f32 %v403_v2, 0.0  ;;  %v756_v8 = vpop.f32.mrb[6].mxu0 }
  0xf2   : > { %v561_v7 = vmax.f32 %v483_v3, 0.0  ;;  %v780_v9 = vpop.f32.mrb[6].mxu1  ;;  %579 = vst.msk [vmem:[%s939_s27 + $0x28] sm:$0xff] %vm573_vm4, %v546_v4  ;;  %v418_v10 = vadd.f32 %v756_v8, %v930_v35  ;;  %v412_v12 = vpop.f32.mrb[7].mxu0 }
  0xf3   : > { %595 = vst.msk [vmem:[%s939_s27 + $0xa8] sm:$0xff] %vm573_vm4, %v562_v5  ;;  %v498_v11 = vadd.f32 %v780_v9, %v930_v35  ;;  %v492_v13 = vpop.f32.mrb[7].mxu1  ;;  %578 = vst.msk [vmem:[%s939_s27 + $0x20] sm:$0xff] %vm573_vm4, %v545_v6  ;;  %v413_v14 = vadd.f32 %v930_v35, %v412_v12 }
  0xf4   : > { %594 = vst.msk [vmem:[%s939_s27 + $0xa0] sm:$0xff] %vm573_vm4, %v561_v7  ;;  %v493_v15 = vadd.f32 %v930_v35, %v492_v13  ;;  %v548_v16 = vmax.f32 %v418_v10, 0.0 }
  0xf5   : > { %v564_v17 = vmax.f32 %v498_v11, 0.0  ;;  %v547_v18 = vmax.f32 %v413_v14, 0.0  ;;  %v759_v20 = vpop.f32.mrb[8].mxu0 }
  0xf6   : > { %v563_v19 = vmax.f32 %v493_v15, 0.0  ;;  %v783_v21 = vpop.f32.mrb[8].mxu1  ;;  %581 = vst.msk [vmem:[%s939_s27 + $0x38] sm:$0xff] %vm573_vm4, %v548_v16  ;;  %v428_v22 = vadd.f32 %v759_v20, %v930_v35  ;;  %v422_v24 = vpop.f32.mrb[9].mxu0 }
  0xf7   : > { %597 = vst.msk [vmem:[%s939_s27 + $0xb8] sm:$0xff] %vm573_vm4, %v564_v17  ;;  %v508_v23 = vadd.f32 %v783_v21, %v930_v35  ;;  %v502_v25 = vpop.f32.mrb[9].mxu1  ;;  %580 = vst.msk [vmem:[%s939_s27 + $0x30] sm:$0xff] %vm573_vm4, %v547_v18  ;;  %v423_v26 = vadd.f32 %v930_v35, %v422_v24 }
  0xf8   : > { %596 = vst.msk [vmem:[%s939_s27 + $0xb0] sm:$0xff] %vm573_vm4, %v563_v19  ;;  %v503_v27 = vadd.f32 %v930_v35, %v502_v25  ;;  %v550_v28 = vmax.f32 %v428_v22, 0.0 }
  0xf9   : > { %v566_v29 = vmax.f32 %v508_v23, 0.0  ;;  %v549_v30 = vmax.f32 %v423_v26, 0.0  ;;  %v762_v32 = vpop.f32.mrb[10].mxu0 }
  0xfa   : > { %v565_v31 = vmax.f32 %v503_v27, 0.0  ;;  %v786_v33 = vpop.f32.mrb[10].mxu1  ;;  %583 = vst.msk [vmem:[%s939_s27 + $0x48] sm:$0xff] %vm573_vm4, %v550_v28  ;;  %v438_v34 = vadd.f32 %v762_v32, %v930_v35  ;;  %v432_v37 = vpop.f32.mrb[11].mxu0 }
  0xfb   : > { %599 = vst.msk [vmem:[%s939_s27 + $0xc8] sm:$0xff] %vm573_vm4, %v566_v29  ;;  %v518_v36 = vadd.f32 %v786_v33, %v930_v35  ;;  %v512_v38 = vpop.f32.mrb[11].mxu1  ;;  %582 = vst.msk [vmem:[%s939_s27 + $0x40] sm:$0xff] %vm573_vm4, %v549_v30  ;;  %v433_v39 = vadd.f32 %v930_v35, %v432_v37 }
  0xfc   : > { %598 = vst.msk [vmem:[%s939_s27 + $0xc0] sm:$0xff] %vm573_vm4, %v565_v31  ;;  %v513_v40 = vadd.f32 %v930_v35, %v512_v38  ;;  %v552_v41 = vmax.f32 %v438_v34, 0.0 }
  0xfd   : > { %v568_v42 = vmax.f32 %v518_v36, 0.0  ;;  %v551_v43 = vmax.f32 %v433_v39, 0.0  ;;  %v765_v45 = vpop.f32.mrb[12].mxu0 }
  0xfe   : > { %v567_v44 = vmax.f32 %v513_v40, 0.0  ;;  %v789_v46 = vpop.f32.mrb[12].mxu1  ;;  %585 = vst.msk [vmem:[%s939_s27 + $0x58] sm:$0xff] %vm573_vm4, %v552_v41  ;;  %v448_v47 = vadd.f32 %v765_v45, %v930_v35  ;;  %v442_v49 = vpop.f32.mrb[13].mxu0 }
  0xff   : > { %601 = vst.msk [vmem:[%s939_s27 + $0xd8] sm:$0xff] %vm573_vm4, %v568_v42  ;;  %v528_v48 = vadd.f32 %v789_v46, %v930_v35  ;;  %v522_v50 = vpop.f32.mrb[13].mxu1  ;;  %584 = vst.msk [vmem:[%s939_s27 + $0x50] sm:$0xff] %vm573_vm4, %v551_v43  ;;  %v443_v51 = vadd.f32 %v930_v35, %v442_v49 }
 0x100   : > { %600 = vst.msk [vmem:[%s939_s27 + $0xd0] sm:$0xff] %vm573_vm4, %v567_v44  ;;  %v523_v52 = vadd.f32 %v930_v35, %v522_v50  ;;  %v554_v53 = vmax.f32 %v448_v47, 0.0 }
 0x101   : > { %v570_v54 = vmax.f32 %v528_v48, 0.0  ;;  %v553_v55 = vmax.f32 %v443_v51, 0.0  ;;  %v768_v57 = vpop.f32.mrb[14].mxu0 }
 0x102   : > { %v569_v56 = vmax.f32 %v523_v52, 0.0  ;;  %v792_v58 = vpop.f32.mrb[14].mxu1  ;;  %587 = vst.msk [vmem:[%s939_s27 + $0x68] sm:$0xff] %vm573_vm4, %v554_v53  ;;  %v458_v59 = vadd.f32 %v768_v57, %v930_v35  ;;  %v452_v61 = vpop.f32.mrb[15].mxu0 }
 0x103   : > { %603 = vst.msk [vmem:[%s939_s27 + $0xe8] sm:$0xff] %vm573_vm4, %v570_v54  ;;  %v538_v60 = vadd.f32 %v792_v58, %v930_v35  ;;  %v532_v62 = vpop.f32.mrb[15].mxu1  ;;  %586 = vst.msk [vmem:[%s939_s27 + $0x60] sm:$0xff] %vm573_vm4, %v553_v55  ;;  %v453_v63 = vadd.f32 %v930_v35, %v452_v61 }
 0x104   : > { %602 = vst.msk [vmem:[%s939_s27 + $0xe0] sm:$0xff] %vm573_vm4, %v569_v56  ;;  %v533_v0 = vadd.f32 %v930_v35, %v532_v62  ;;  %v556_v1 = vmax.f32 %v458_v59, 0.0 }
 0x105   : > { %v572_v2 = vmax.f32 %v538_v60, 0.0  ;;  %v555_v3 = vmax.f32 %v453_v63, 0.0 }
 0x106   : > { %v571_v4 = vmax.f32 %v533_v0, 0.0  ;;  %589 = vst.msk [vmem:[%s939_s27 + $0x78] sm:$0xff] %vm573_vm4, %v556_v1 }
 0x107   : > { %605 = vst.msk [vmem:[%s939_s27 + $0xf8] sm:$0xff] %vm573_vm4, %v572_v2  ;;  %588 = vst.msk [vmem:[%s939_s27 + $0x70] sm:$0xff] %vm573_vm4, %v555_v3 }
 0x108   : > { %604 = vst.msk [vmem:[%s939_s27 + $0xf0] sm:$0xff] %vm573_vm4, %v571_v4 }
 0x109 PF: > { %s13_s12 = sadd.s32 1, %s816_s12  }
 0x10a   : > { %p10_p4 = scmp.ge.s32.totalorder %s13_s12, 4  }
 0x10c   :  { %12 = sbr.rel (!%p10_p4) target bundleno = 1 (0x1), region = 62 }

// kernel: _lambda_.8
= control target key start
LH: loop header
LB: loop body
LE: loop exit
PB: predicated region body
PF: predicated region fallthrough
CT: control target
= control target key end

     0   :  { %vm83_vm0 = vcmask 293888   ;;  %vm276_vm1 = vcmask 1043456   ;;  %vm665_vm2 = vcmask 31744   ;;  %s1604_s1 = inlined_call_operand.vmem [shape: f32[36,4], index: 1, kind: input, shape index: {}]   ;;  %s1605_s0 = inlined_call_operand.vmem [shape: f32[4,128,36], index: 0, kind: input, shape index: {}]   ;;  %s1606_s2 = inlined_call_operand.vmem [shape: f32[1,4], index: 2, kind: input, shape index: {}]   ;;  %s1607_s3 = inlined_call_operand.vmem [shape: f32[128,4], index: 3, kind: output, shape index: {}]  }
   0x1   :  { %v78_v0 = vld [vmem:[%s1604_s1] sm:$0xff]  ;;  %v79_v1 = vld [vmem:[%s1604_s1 + $0x8] sm:$0xff]  ;;  %v80_v2 = vld [vmem:[%s1604_s1 + $0x10] sm:$0xff] }
   0x2   :  { %v1078_v3 = vpack.c.bf16 %v79_v1, %v78_v0  ;;  %v81_v4 = vld [vmem:[%s1604_s1 + $0x18] sm:$0xff]  ;;  %v14_v5 = vld [vmem:[%s1605_s0] sm:$0xff]  ;;  %v15_v9 = vld [vmem:[%s1605_s0 + $0x8] sm:$0xff] }
   0x3   :  { %v1082_v6 = vpack.c.bf16 %v81_v4, %v80_v2  ;;  %982 = vmatprep.mubr.msk.f32.mxu0 %vm83_vm0, %v14_v5  ;;  %v46_v7 = vld [vmem:[%s1605_s0 + $0x100] sm:$0xff]  ;;  %v47_v10 = vld [vmem:[%s1605_s0 + $0x108] sm:$0xff]  ;;  %v16_v11 = vld [vmem:[%s1605_s0 + $0x10] sm:$0xff] }
   0x4   :  { %1079 = vmatprep.subr.bf16.mxu0 %v1078_v3  ;;  %1086 = vmatprep.subr.bf16.mxu1 %v1078_v3  ;;  %v82_v8 = vld [vmem:[%s1604_s1 + $0x20] sm:$0xf]  ;;  %v48_v12 = vld [vmem:[%s1605_s0 + $0x110] sm:$0xff]  ;;  %v17_v13 = vld [vmem:[%s1605_s0 + $0x18] sm:$0xff] }
   0x5   :  { %1081 = vmatpush3.bf16.msra.mxu0 %v1078_v3  ;;  %1089 = vmatpush3.bf16.msra.mxu1 %v1078_v3  ;;  %v49_v14 = vld [vmem:[%s1605_s0 + $0x118] sm:$0xff]  ;;  %v18_v15 = vld [vmem:[%s1605_s0 + $0x20] sm:$0xff]  ;;  %v19_v17 = vld [vmem:[%s1605_s0 + $0x28] sm:$0xff] }
   0x6   :  { %1083 = vmatprep.subr.bf16.mxu0 %v1082_v6  ;;  %1087 = vmatprep.subr.bf16.mxu1 %v1082_v6  ;;  %v50_v16 = vld [vmem:[%s1605_s0 + $0x120] sm:$0xff]  ;;  %v51_v18 = vld [vmem:[%s1605_s0 + $0x128] sm:$0xff]  ;;  %v20_v19 = vld [vmem:[%s1605_s0 + $0x30] sm:$0xff] }
   0x7   :  { %1030 = vmatprep.mubr.msk.f32.mxu1 %vm83_vm0, %v46_v7  ;;  %v52_v20 = vld [vmem:[%s1605_s0 + $0x130] sm:$0xff]  ;;  %v21_v21 = vld [vmem:[%s1605_s0 + $0x38] sm:$0xff]  ;;  %v22_v23 = vld [vmem:[%s1605_s0 + $0x40] sm:$0xff] }
   0x8   :  { %v53_v22 = vld [vmem:[%s1605_s0 + $0x138] sm:$0xff]  ;;  %v54_v24 = vld [vmem:[%s1605_s0 + $0x140] sm:$0xff]  ;;  %v23_v25 = vld [vmem:[%s1605_s0 + $0x48] sm:$0xff] }
   0x9   :  { %1085 = vmatpush3.bf16.msra.mxu0 %v1082_v6  ;;  %1090 = vmatpush3.bf16.msra.mxu1 %v1082_v6  ;;  %v55_v26 = vld [vmem:[%s1605_s0 + $0x148] sm:$0xff]  ;;  %v24_v27 = vld [vmem:[%s1605_s0 + $0x50] sm:$0xff]  ;;  %v25_v29 = vld [vmem:[%s1605_s0 + $0x58] sm:$0xff] }
   0xa   :  { %980 = vmatprep.subr.msk.mxu0 %vm276_vm1, %v82_v8  ;;  %1088 = vmatprep.subr.msk.mxu1 %vm276_vm1, %v82_v8  ;;  %v56_v28 = vld [vmem:[%s1605_s0 + $0x150] sm:$0xff]  ;;  %v57_v30 = vld [vmem:[%s1605_s0 + $0x158] sm:$0xff]  ;;  %v26_v31 = vld [vmem:[%s1605_s0 + $0x60] sm:$0xff] }
   0xb   :  { %v58_v32 = vld [vmem:[%s1605_s0 + $0x160] sm:$0xff]  ;;  %v27_v33 = vld [vmem:[%s1605_s0 + $0x68] sm:$0xff]  ;;  %v28_v35 = vld [vmem:[%s1605_s0 + $0x70] sm:$0xff] }
   0xc   :  { %v59_v34 = vld [vmem:[%s1605_s0 + $0x168] sm:$0xff]  ;;  %v60_v36 = vld [vmem:[%s1605_s0 + $0x170] sm:$0xff]  ;;  %v29_v37 = vld [vmem:[%s1605_s0 + $0x78] sm:$0xff] }
   0xd   :  { %981 = vmatpush3.msk.msra.mxu0 %vm276_vm1, %v82_v8  ;;  %1091 = vmatpush3.msk.msra.mxu1 %vm276_vm1, %v82_v8  ;;  %v61_v38 = vld [vmem:[%s1605_s0 + $0x178] sm:$0xff]  ;;  %v30_v39 = vld [vmem:[%s1605_s0 + $0x80] sm:$0xff]  ;;  %v31_v41 = vld [vmem:[%s1605_s0 + $0x88] sm:$0xff] }
   0xe   :  { %983 = vmatmul.mubr.msk.f32.vlgmr.msra.gmra.mrb[0].mxu0 %vm83_vm0, %v15_v9  ;;  %1031 = vmatmul.mubr.msk.f32.vlgmr.msra.gmra.mrb[0].mxu1 %vm83_vm0, %v47_v10  ;;  %v62_v40 = vld [vmem:[%s1605_s0 + $0x180] sm:$0xff]  ;;  %v63_v42 = vld [vmem:[%s1605_s0 + $0x188] sm:$0xff]  ;;  %v32_v43 = vld [vmem:[%s1605_s0 + $0x90] sm:$0xff] }
   0xf   :  { %985 = vmatprep.mubr.msk.f32.mxu0 %vm83_vm0, %v16_v11  ;;  %1033 = vmatprep.mubr.msk.f32.mxu1 %vm83_vm0, %v48_v12  ;;  %v64_v44 = vld [vmem:[%s1605_s0 + $0x190] sm:$0xff]  ;;  %v33_v45 = vld [vmem:[%s1605_s0 + $0x98] sm:$0xff]  ;;  %v34_v47 = vld [vmem:[%s1605_s0 + $0xa0] sm:$0xff] }
  0x10   :  { %v65_v46 = vld [vmem:[%s1605_s0 + $0x198] sm:$0xff]  ;;  %v66_v48 = vld [vmem:[%s1605_s0 + $0x1a0] sm:$0xff]  ;;  %v35_v49 = vld [vmem:[%s1605_s0 + $0xa8] sm:$0xff] }
  0x11   :  { %v67_v50 = vld [vmem:[%s1605_s0 + $0x1a8] sm:$0xff]  ;;  %v36_v51 = vld [vmem:[%s1605_s0 + $0xb0] sm:$0xff]  ;;  %v37_v53 = vld [vmem:[%s1605_s0 + $0xb8] sm:$0xff] }
  0x12   :  { %986 = vmatmul.mubr.msk.f32.gmra.mrb[2].mxu0 %vm83_vm0, %v17_v13  ;;  %1034 = vmatmul.mubr.msk.f32.gmra.mrb[2].mxu1 %vm83_vm0, %v49_v14  ;;  %v68_v52 = vld [vmem:[%s1605_s0 + $0x1b0] sm:$0xff]  ;;  %v69_v54 = vld [vmem:[%s1605_s0 + $0x1b8] sm:$0xff]  ;;  %v38_v55 = vld [vmem:[%s1605_s0 + $0xc0] sm:$0xff] }
  0x13   :  { %988 = vmatprep.mubr.msk.f32.mxu0 %vm83_vm0, %v18_v15  ;;  %1036 = vmatprep.mubr.msk.f32.mxu1 %vm83_vm0, %v50_v16  ;;  %v70_v56 = vld [vmem:[%s1605_s0 + $0x1c0] sm:$0xff]  ;;  %v39_v57 = vld [vmem:[%s1605_s0 + $0xc8] sm:$0xff]  ;;  %v40_v59 = vld [vmem:[%s1605_s0 + $0xd0] sm:$0xff] }
  0x14   :  { %v71_v58 = vld [vmem:[%s1605_s0 + $0x1c8] sm:$0xff]  ;;  %v72_v60 = vld [vmem:[%s1605_s0 + $0x1d0] sm:$0xff]  ;;  %v41_v61 = vld [vmem:[%s1605_s0 + $0xd8] sm:$0xff] }
  0x15   :  { %v73_v62 = vld [vmem:[%s1605_s0 + $0x1d8] sm:$0xff]  ;;  %v42_v63 = vld [vmem:[%s1605_s0 + $0xe0] sm:$0xff]  ;;  %v43_v1 = vld [vmem:[%s1605_s0 + $0xe8] sm:$0xff] }
  0x16   :  { %989 = vmatmul.mubr.msk.f32.gmra.mrb[4].mxu0 %vm83_vm0, %v19_v17  ;;  %1037 = vmatmul.mubr.msk.f32.gmra.mrb[4].mxu1 %vm83_vm0, %v51_v18  ;;  %v74_v0 = vld [vmem:[%s1605_s0 + $0x1e0] sm:$0xff]  ;;  %v75_v2 = vld [vmem:[%s1605_s0 + $0x1e8] sm:$0xff]  ;;  %v44_v3 = vld [vmem:[%s1605_s0 + $0xf0] sm:$0xff] }
  0x17   :  { %991 = vmatprep.mubr.msk.f32.mxu0 %vm83_vm0, %v20_v19  ;;  %1039 = vmatprep.mubr.msk.f32.mxu1 %vm83_vm0, %v52_v20  ;;  %v76_v4 = vld [vmem:[%s1605_s0 + $0x1f0] sm:$0xff]  ;;  %v45_v5 = vld [vmem:[%s1605_s0 + $0xf8] sm:$0xff] }
  0x18   :  { %v77_v6 = vld [vmem:[%s1605_s0 + $0x1f8] sm:$0xff] }
  0x1a   :  { %992 = vmatmul.mubr.msk.f32.gmra.mrb[6].mxu0 %vm83_vm0, %v21_v21  ;;  %1040 = vmatmul.mubr.msk.f32.gmra.mrb[6].mxu1 %vm83_vm0, %v53_v22 }
  0x1b   :  { %994 = vmatprep.mubr.msk.f32.mxu0 %vm83_vm0, %v22_v23  ;;  %1042 = vmatprep.mubr.msk.f32.mxu1 %vm83_vm0, %v54_v24 }
  0x1e   :  { %995 = vmatmul.mubr.msk.f32.gmra.mrb[8].mxu0 %vm83_vm0, %v23_v25  ;;  %1043 = vmatmul.mubr.msk.f32.gmra.mrb[8].mxu1 %vm83_vm0, %v55_v26 }
  0x1f   :  { %997 = vmatprep.mubr.msk.f32.mxu0 %vm83_vm0, %v24_v27  ;;  %1045 = vmatprep.mubr.msk.f32.mxu1 %vm83_vm0, %v56_v28 }
  0x22   :  { %998 = vmatmul.mubr.msk.f32.gmra.mrb[10].mxu0 %vm83_vm0, %v25_v29  ;;  %1046 = vmatmul.mubr.msk.f32.gmra.mrb[10].mxu1 %vm83_vm0, %v57_v30 }
  0x23   :  { %1000 = vmatprep.mubr.msk.f32.mxu0 %vm83_vm0, %v26_v31  ;;  %1048 = vmatprep.mubr.msk.f32.mxu1 %vm83_vm0, %v58_v32 }
  0x26   :  { %1001 = vmatmul.mubr.msk.f32.gmra.mrb[12].mxu0 %vm83_vm0, %v27_v33  ;;  %1049 = vmatmul.mubr.msk.f32.gmra.mrb[12].mxu1 %vm83_vm0, %v59_v34 }
  0x27   :  { %1003 = vmatprep.mubr.msk.f32.mxu0 %vm83_vm0, %v28_v35  ;;  %1051 = vmatprep.mubr.msk.f32.mxu1 %vm83_vm0, %v60_v36 }
  0x2a   :  { %1004 = vmatmul.mubr.msk.f32.gmra.mrb[14].mxu0 %vm83_vm0, %v29_v37  ;;  %1052 = vmatmul.mubr.msk.f32.gmra.mrb[14].mxu1 %vm83_vm0, %v61_v38 }
  0x2b   :  { %1006 = vmatprep.mubr.msk.f32.mxu0 %vm83_vm0, %v30_v39  ;;  %1054 = vmatprep.mubr.msk.f32.mxu1 %vm83_vm0, %v62_v40 }
  0x2e   :  { %1007 = vmatmul.mubr.msk.f32.gmra.mrb[16].mxu0 %vm83_vm0, %v31_v41  ;;  %1055 = vmatmul.mubr.msk.f32.gmra.mrb[16].mxu1 %vm83_vm0, %v63_v42 }
  0x2f   :  { %1009 = vmatprep.mubr.msk.f32.mxu0 %vm83_vm0, %v32_v43  ;;  %1057 = vmatprep.mubr.msk.f32.mxu1 %vm83_vm0, %v64_v44 }
  0x32   :  { %1010 = vmatmul.mubr.msk.f32.gmra.mrb[18].mxu0 %vm83_vm0, %v33_v45  ;;  %1058 = vmatmul.mubr.msk.f32.gmra.mrb[18].mxu1 %vm83_vm0, %v65_v46 }
  0x33   :  { %1012 = vmatprep.mubr.msk.f32.mxu0 %vm83_vm0, %v34_v47  ;;  %1060 = vmatprep.mubr.msk.f32.mxu1 %vm83_vm0, %v66_v48 }
  0x36   :  { %1013 = vmatmul.mubr.msk.f32.gmra.mrb[20].mxu0 %vm83_vm0, %v35_v49  ;;  %1061 = vmatmul.mubr.msk.f32.gmra.mrb[20].mxu1 %vm83_vm0, %v67_v50 }
  0x37   :  { %1015 = vmatprep.mubr.msk.f32.mxu0 %vm83_vm0, %v36_v51  ;;  %1063 = vmatprep.mubr.msk.f32.mxu1 %vm83_vm0, %v68_v52 }
  0x3a   :  { %1016 = vmatmul.mubr.msk.f32.gmra.mrb[22].mxu0 %vm83_vm0, %v37_v53  ;;  %1064 = vmatmul.mubr.msk.f32.gmra.mrb[22].mxu1 %vm83_vm0, %v69_v54 }
  0x3b   :  { %1018 = vmatprep.mubr.msk.f32.mxu0 %vm83_vm0, %v38_v55  ;;  %1066 = vmatprep.mubr.msk.f32.mxu1 %vm83_vm0, %v70_v56 }
  0x3e   :  { %1019 = vmatmul.mubr.msk.f32.gmra.mrb[24].mxu0 %vm83_vm0, %v39_v57  ;;  %1067 = vmatmul.mubr.msk.f32.gmra.mrb[24].mxu1 %vm83_vm0, %v71_v58 }
  0x3f   :  { %1021 = vmatprep.mubr.msk.f32.mxu0 %vm83_vm0, %v40_v59  ;;  %1069 = vmatprep.mubr.msk.f32.mxu1 %vm83_vm0, %v72_v60 }
  0x42   :  { %1022 = vmatmul.mubr.msk.f32.gmra.mrb[26].mxu0 %vm83_vm0, %v41_v61  ;;  %1070 = vmatmul.mubr.msk.f32.gmra.mrb[26].mxu1 %vm83_vm0, %v73_v62  ;;  %v1428_v61 = vld [vmem:[%s1606_s2] ss:$0 sm:$0xff] }
  0x43   :  { %1024 = vmatprep.mubr.msk.f32.mxu0 %vm83_vm0, %v42_v63  ;;  %1072 = vmatprep.mubr.msk.f32.mxu1 %vm83_vm0, %v74_v0 }
  0x46   :  { %1025 = vmatmul.mubr.msk.f32.gmra.mrb[28].mxu0 %vm83_vm0, %v43_v1  ;;  %1073 = vmatmul.mubr.msk.f32.gmra.mrb[28].mxu1 %vm83_vm0, %v75_v2 }
  0x47   :  { %1027 = vmatprep.mubr.msk.f32.mxu0 %vm83_vm0, %v44_v3  ;;  %1075 = vmatprep.mubr.msk.f32.mxu1 %vm83_vm0, %v76_v4 }
  0x4a   :  { %1028 = vmatmul.mubr.msk.f32.gmra.mrb[30].mxu0 %vm83_vm0, %v45_v5  ;;  %1076 = vmatmul.mubr.msk.f32.gmra.mrb[30].mxu1 %vm83_vm0, %v77_v6 }
  0xe1   :  { %v984_v7 = vpop.f32.mrb[0].mxu0  ;;  %v1032_v8 = vpop.f32.mrb[0].mxu1 }
  0xe2   :  { %v346_v9 = vpop.f32.mrb[1].mxu0  ;;  %v506_v10 = vpop.f32.mrb[1].mxu1  ;;  %v673_v39 = vsel %vm665_vm2, %v984_v7, -inf  ;;  %v676_v40 = vsel %vm665_vm2, %v1032_v8, -inf }
  0xe3   :  { %v666_v41 = vsel %vm665_vm2, %v346_v9, -inf  ;;  %v669_v43 = vsel %vm665_vm2, %v506_v10, -inf }
  0xe5   :  { %v987_v11 = vpop.f32.mrb[2].mxu0  ;;  %v1035_v12 = vpop.f32.mrb[2].mxu1 }
  0xe6   :  { %v356_v13 = vpop.f32.mrb[3].mxu0  ;;  %v516_v14 = vpop.f32.mrb[3].mxu1  ;;  %v687_v42 = vsel %vm665_vm2, %v987_v11, -inf  ;;  %v690_v44 = vsel %vm665_vm2, %v1035_v12, -inf }
  0xe7   :  { %v680_v47 = vsel %vm665_vm2, %v356_v13, -inf  ;;  %v683_v49 = vsel %vm665_vm2, %v516_v14, -inf }
  0xe9   :  { %v990_v15 = vpop.f32.mrb[4].mxu0  ;;  %v1038_v16 = vpop.f32.mrb[4].mxu1 }
  0xea   :  { %v366_v17 = vpop.f32.mrb[5].mxu0  ;;  %v526_v18 = vpop.f32.mrb[5].mxu1  ;;  %v701_v48 = vsel %vm665_vm2, %v990_v15, -inf  ;;  %v704_v54 = vsel %vm665_vm2, %v1038_v16, -inf }
  0xeb   :  { %v694_v53 = vsel %vm665_vm2, %v366_v17, -inf  ;;  %v697_v58 = vsel %vm665_vm2, %v526_v18, -inf }
  0xed   :  { %v993_v19 = vpop.f32.mrb[6].mxu0  ;;  %v1041_v20 = vpop.f32.mrb[6].mxu1 }
  0xee   :  { %v376_v21 = vpop.f32.mrb[7].mxu0  ;;  %v536_v22 = vpop.f32.mrb[7].mxu1  ;;  %v1421_v57 = vsel %vm665_vm2, %v993_v19, -inf  ;;  %v1434_v63 = vsel %vm665_vm2, %v1041_v20, -inf }
  0xef   :  { %v1431_v62 = vsel %vm665_vm2, %v376_v21, -inf  ;;  %v1441_v5 = vsel %vm665_vm2, %v536_v22, -inf }
  0xf1   :  { %v996_v23 = vpop.f32.mrb[8].mxu0  ;;  %v1044_v24 = vpop.f32.mrb[8].mxu1 }
  0xf2   :  { %v386_v25 = vpop.f32.mrb[9].mxu0  ;;  %v546_v26 = vpop.f32.mrb[9].mxu1  ;;  %v1438_v4 = vsel %vm665_vm2, %v996_v23, -inf  ;;  %v1445_v10 = vsel %vm665_vm2, %v1044_v24, -inf }
  0xf3   :  { %v1449_v14 = vsel %vm665_vm2, %v386_v25, -inf  ;;  %v1453_v18 = vsel %vm665_vm2, %v546_v26, -inf }
  0xf5   :  { %v1383_v27 = vpop.f32.mrb[10].mxu0  ;;  %v1385_v28 = vpop.f32.mrb[10].mxu1 }
  0xf6   :  { %v1387_v29 = vpop.f32.mrb[11].mxu0  ;;  %v1389_v30 = vpop.f32.mrb[11].mxu1  ;;  %v1459_v24 = vsel %vm665_vm2, %v1383_v27, -inf  ;;  %v1467_v27 = vsel %vm665_vm2, %v1385_v28, -inf }
  0xf9   :  { %v1391_v31 = vpop.f32.mrb[12].mxu0  ;;  %v1393_v32 = vpop.f32.mrb[12].mxu1 }
  0xfa   :  { %v1395_v33 = vpop.f32.mrb[13].mxu0  ;;  %v1397_v34 = vpop.f32.mrb[13].mxu1 }
  0xfd   :  { %v1399_v35 = vpop.f32.mrb[14].mxu0  ;;  %v1401_v36 = vpop.f32.mrb[14].mxu1 }
  0xfe   :  { %v1403_v37 = vpop.f32.mrb[15].mxu0  ;;  %v1405_v38 = vpop.f32.mrb[15].mxu1 }
 0x101   :  { %v1008_v45 = vpop.f32.mrb[16].mxu0  ;;  %v1056_v46 = vpop.f32.mrb[16].mxu1 }
 0x102   :  { %v674_v50 = vsel %vm665_vm2, %v1008_v45, -inf  ;;  %v426_v51 = vpop.f32.mrb[17].mxu0  ;;  %v586_v52 = vpop.f32.mrb[17].mxu1  ;;  %v678_v60 = vsel %vm665_vm2, %v1056_v46, -inf }
 0x103   :  { %v675_v55 = vmax.f32 %v673_v39, %v674_v50  ;;  %v667_v56 = vsel %vm665_vm2, %v426_v51, -inf  ;;  %v671_v2 = vsel %vm665_vm2, %v586_v52, -inf }
 0x104   :  { %v668_v59 = vmax.f32 %v666_v41, %v667_v56 }
 0x105   :  { %v677_v0 = vmax.f32 %v675_v55, %v676_v40  ;;  %v1011_v1 = vpop.f32.mrb[18].mxu0  ;;  %v1059_v3 = vpop.f32.mrb[18].mxu1 }
 0x106   :  { %v688_v6 = vsel %vm665_vm2, %v1011_v1, -inf  ;;  %v670_v7 = vmax.f32 %v668_v59, %v669_v43  ;;  %v436_v8 = vpop.f32.mrb[19].mxu0  ;;  %v596_v9 = vpop.f32.mrb[19].mxu1  ;;  %v692_v17 = vsel %vm665_vm2, %v1059_v3, -inf }
 0x107   :  { %v679_v11 = vmax.f32 %v677_v0, %v678_v60  ;;  %v689_v12 = vmax.f32 %v687_v42, %v688_v6  ;;  %v681_v13 = vsel %vm665_vm2, %v436_v8, -inf  ;;  %v685_v22 = vsel %vm665_vm2, %v596_v9, -inf }
 0x108   :  { %v672_v15 = vmax.f32 %v670_v7, %v671_v2  ;;  %v682_v16 = vmax.f32 %v680_v47, %v681_v13 }
 0x109   :  { %v786_v19 = vadd.f32 %v1428_v61, %v679_v11  ;;  %v691_v20 = vmax.f32 %v689_v12, %v690_v44  ;;  %v1014_v21 = vpop.f32.mrb[20].mxu0  ;;  %v1062_v23 = vpop.f32.mrb[20].mxu1  ;;  %v739_v11 = vsel %vm665_vm2, %v1389_v30, -inf }
 0x10a   :  { %v785_v25 = vadd.f32 %v1428_v61, %v672_v15  ;;  %v702_v39 = vsel %vm665_vm2, %v1014_v21, -inf  ;;  %v684_v40 = vmax.f32 %v682_v16, %v683_v49  ;;  %v446_v41 = vpop.f32.mrb[21].mxu0  ;;  %v606_v42 = vpop.f32.mrb[21].mxu1  ;;  %v706_v51 = vsel %vm665_vm2, %v1062_v23, -inf }
 0x10b   :  { %v802_v26 = vmax.f32 %v786_v19, 0.0  ;;  %v693_v43 = vmax.f32 %v691_v20, %v692_v17  ;;  %v703_v45 = vmax.f32 %v701_v48, %v702_v39  ;;  %v695_v44 = vsel %vm665_vm2, %v446_v41, -inf }
 0x10c   :  { %v801_v46 = vmax.f32 %v785_v25, 0.0  ;;  %v686_v47 = vmax.f32 %v684_v40, %v685_v22  ;;  %v696_v50 = vmax.f32 %v694_v53, %v695_v44  ;;  %v699_v55 = vsel %vm665_vm2, %v606_v42, -inf }
 0x10d   :  { %818 = vst.msk [vmem:[%s1607_s3 + $0x8] sm:$0xff] %vm665_vm2, %v802_v26  ;;  %v788_v49 = vadd.f32 %v1428_v61, %v693_v43  ;;  %v705_v52 = vmax.f32 %v703_v45, %v704_v54  ;;  %v1017_v48 = vpop.f32.mrb[22].mxu0  ;;  %v1065_v56 = vpop.f32.mrb[22].mxu1  ;;  %v1477_v53 = vsel %vm665_vm2, %v1387_v29, -inf  ;;  %v760_v41 = vsel %vm665_vm2, %v1393_v32, -inf }
 0x10e   :  { %817 = vst.msk [vmem:[%s1607_s3] sm:$0xff] %vm665_vm2, %v801_v46  ;;  %v787_v28 = vadd.f32 %v1428_v61, %v686_v47  ;;  %v716_v59 = vsel %vm665_vm2, %v1017_v48, -inf  ;;  %v698_v60 = vmax.f32 %v696_v50, %v697_v58  ;;  %v456_v0 = vpop.f32.mrb[23].mxu0  ;;  %v616_v54 = vpop.f32.mrb[23].mxu1  ;;  %v720_v9 = vsel %vm665_vm2, %v1065_v56, -inf }
 0x10f   :  { %v804_v1 = vmax.f32 %v788_v49, 0.0  ;;  %v707_v2 = vmax.f32 %v705_v52, %v706_v51  ;;  %v717_v3 = vmax.f32 %v1421_v57, %v716_v59  ;;  %v709_v6 = vsel %vm665_vm2, %v456_v0, -inf }
 0x110   :  { %v803_v29 = vmax.f32 %v787_v28, 0.0  ;;  %v700_v7 = vmax.f32 %v698_v60, %v699_v55  ;;  %v710_v8 = vmax.f32 %v1431_v62, %v709_v6  ;;  %v713_v13 = vsel %vm665_vm2, %v616_v54, -inf }
 0x111   :  { %820 = vst.msk [vmem:[%s1607_s3 + $0x18] sm:$0xff] %vm665_vm2, %v804_v1  ;;  %v790_v58 = vadd.f32 %v1428_v61, %v707_v2  ;;  %v719_v57 = vmax.f32 %v717_v3, %v1434_v63  ;;  %v1020_v12 = vpop.f32.mrb[24].mxu0  ;;  %v1068_v15 = vpop.f32.mrb[24].mxu1  ;;  %v1500_v62 = vsel %vm665_vm2, %v1391_v31, -inf  ;;  %v753_v56 = vsel %vm665_vm2, %v1397_v34, -inf }
 0x112   :  { %819 = vst.msk [vmem:[%s1607_s3 + $0x10] sm:$0xff] %vm665_vm2, %v803_v29  ;;  %v789_v30 = vadd.f32 %v1428_v61, %v700_v7  ;;  %v730_v16 = vsel %vm665_vm2, %v1020_v12, -inf  ;;  %v712_v17 = vmax.f32 %v710_v8, %v1441_v5  ;;  %v466_v63 = vpop.f32.mrb[25].mxu0  ;;  %v626_v19 = vpop.f32.mrb[25].mxu1  ;;  %v734_v40 = vsel %vm665_vm2, %v1068_v15, -inf }
 0x113   :  { %v806_v20 = vmax.f32 %v790_v58, 0.0  ;;  %v721_v21 = vmax.f32 %v719_v57, %v720_v9  ;;  %v731_v22 = vmax.f32 %v1438_v4, %v730_v16  ;;  %v723_v31 = vsel %vm665_vm2, %v466_v63, -inf }
 0x114   :  { %v805_v23 = vmax.f32 %v789_v30, 0.0  ;;  %v714_v25 = vmax.f32 %v712_v17, %v713_v13  ;;  %v724_v39 = vmax.f32 %v1449_v14, %v723_v31  ;;  %v727_v26 = vsel %vm665_vm2, %v626_v19, -inf }
 0x115   :  { %822 = vst.msk [vmem:[%s1607_s3 + $0x28] sm:$0xff] %vm665_vm2, %v806_v20  ;;  %v792_v5 = vadd.f32 %v1428_v61, %v721_v21  ;;  %v733_v4 = vmax.f32 %v731_v22, %v1445_v10  ;;  %v1023_v42 = vpop.f32.mrb[26].mxu0  ;;  %v1071_v43 = vpop.f32.mrb[26].mxu1  ;;  %v750_v14 = vsel %vm665_vm2, %v1395_v33, -inf  ;;  %v774_v58 = vsel %vm665_vm2, %v1401_v36, -inf }
 0x116   :  { %821 = vst.msk [vmem:[%s1607_s3 + $0x20] sm:$0xff] %vm665_vm2, %v805_v23  ;;  %v791_v32 = vadd.f32 %v1428_v61, %v714_v25  ;;  %v744_v45 = vsel %vm665_vm2, %v1023_v42, -inf  ;;  %v726_v44 = vmax.f32 %v724_v39, %v1453_v18  ;;  %v476_v46 = vpop.f32.mrb[27].mxu0  ;;  %v636_v10 = vpop.f32.mrb[27].mxu1  ;;  %v748_v55 = vsel %vm665_vm2, %v1071_v43, -inf }
 0x117   :  { %v808_v47 = vmax.f32 %v792_v5, 0.0  ;;  %v735_v50 = vmax.f32 %v733_v4, %v734_v40  ;;  %v745_v51 = vmax.f32 %v1459_v24, %v744_v45  ;;  %v737_v49 = vsel %vm665_vm2, %v476_v46, -inf }
 0x118   :  { %v807_v33 = vmax.f32 %v791_v32, 0.0  ;;  %v728_v52 = vmax.f32 %v726_v44, %v727_v26  ;;  %v738_v48 = vmax.f32 %v1477_v53, %v737_v49  ;;  %v741_v59 = vsel %vm665_vm2, %v636_v10, -inf }
 0x119   :  { %824 = vst.msk [vmem:[%s1607_s3 + $0x38] sm:$0xff] %vm665_vm2, %v808_v47  ;;  %v794_v18 = vadd.f32 %v1428_v61, %v735_v50  ;;  %v747_v24 = vmax.f32 %v745_v51, %v1467_v27  ;;  %v1026_v28 = vpop.f32.mrb[28].mxu0  ;;  %v1074_v60 = vpop.f32.mrb[28].mxu1  ;;  %v771_v53 = vsel %vm665_vm2, %v1399_v35, -inf  ;;  %v767_v39 = vsel %vm665_vm2, %v1405_v38, -inf }
 0x11a   :  { %823 = vst.msk [vmem:[%s1607_s3 + $0x30] sm:$0xff] %vm665_vm2, %v807_v33  ;;  %v793_v34 = vadd.f32 %v1428_v61, %v728_v52  ;;  %v758_v0 = vsel %vm665_vm2, %v1026_v28, -inf  ;;  %v740_v54 = vmax.f32 %v738_v48, %v739_v11  ;;  %v486_v1 = vpop.f32.mrb[29].mxu0  ;;  %v646_v2 = vpop.f32.mrb[29].mxu1  ;;  %v762_v9 = vsel %vm665_vm2, %v1074_v60, -inf }
 0x11b   :  { %v810_v27 = vmax.f32 %v794_v18, 0.0  ;;  %v749_v3 = vmax.f32 %v747_v24, %v748_v55  ;;  %v759_v6 = vmax.f32 %v1500_v62, %v758_v0  ;;  %v751_v29 = vsel %vm665_vm2, %v486_v1, -inf }
 0x11c   :  { %v809_v7 = vmax.f32 %v793_v34, 0.0  ;;  %v742_v35 = vmax.f32 %v740_v54, %v741_v59  ;;  %v752_v8 = vmax.f32 %v750_v14, %v751_v29  ;;  %v755_v13 = vsel %vm665_vm2, %v646_v2, -inf }
 0x11d   :  { %826 = vst.msk [vmem:[%s1607_s3 + $0x48] sm:$0xff] %vm665_vm2, %v810_v27  ;;  %v796_v11 = vadd.f32 %v1428_v61, %v749_v3  ;;  %v761_v57 = vmax.f32 %v759_v6, %v760_v41  ;;  %v1029_v12 = vpop.f32.mrb[30].mxu0  ;;  %v1077_v15 = vpop.f32.mrb[30].mxu1  ;;  %v764_v62 = vsel %vm665_vm2, %v1403_v37, -inf }
 0x11e   :  { %825 = vst.msk [vmem:[%s1607_s3 + $0x40] sm:$0xff] %vm665_vm2, %v809_v7  ;;  %v795_v36 = vadd.f32 %v1428_v61, %v742_v35  ;;  %v772_v30 = vsel %vm665_vm2, %v1029_v12, -inf  ;;  %v754_v16 = vmax.f32 %v752_v8, %v753_v56  ;;  %v496_v17 = vpop.f32.mrb[31].mxu0  ;;  %v656_v63 = vpop.f32.mrb[31].mxu1  ;;  %v776_v25 = vsel %vm665_vm2, %v1077_v15, -inf }
 0x11f   :  { %v812_v19 = vmax.f32 %v796_v11, 0.0  ;;  %v763_v20 = vmax.f32 %v761_v57, %v762_v9  ;;  %v773_v21 = vmax.f32 %v771_v53, %v772_v30  ;;  %v765_v22 = vsel %vm665_vm2, %v496_v17, -inf }
 0x120   :  { %v811_v31 = vmax.f32 %v795_v36, 0.0  ;;  %v756_v23 = vmax.f32 %v754_v16, %v755_v13  ;;  %v766_v37 = vmax.f32 %v764_v62, %v765_v22  ;;  %v769_v5 = vsel %vm665_vm2, %v656_v63, -inf }
 0x121   :  { %828 = vst.msk [vmem:[%s1607_s3 + $0x58] sm:$0xff] %vm665_vm2, %v812_v19  ;;  %v798_v40 = vadd.f32 %v1428_v61, %v763_v20  ;;  %v775_v41 = vmax.f32 %v773_v21, %v774_v58 }
 0x122   :  { %827 = vst.msk [vmem:[%s1607_s3 + $0x50] sm:$0xff] %vm665_vm2, %v811_v31  ;;  %v797_v4 = vadd.f32 %v1428_v61, %v756_v23  ;;  %v768_v42 = vmax.f32 %v766_v37, %v767_v39 }
 0x123   :  { %v814_v26 = vmax.f32 %v798_v40, 0.0  ;;  %v777_v38 = vmax.f32 %v775_v41, %v776_v25 }
 0x124   :  { %v813_v43 = vmax.f32 %v797_v4, 0.0  ;;  %v770_v14 = vmax.f32 %v768_v42, %v769_v5 }
 0x125   :  { %830 = vst.msk [vmem:[%s1607_s3 + $0x68] sm:$0xff] %vm665_vm2, %v814_v26  ;;  %v800_v32 = vadd.f32 %v1428_v61, %v777_v38 }
 0x126   :  { %829 = vst.msk [vmem:[%s1607_s3 + $0x60] sm:$0xff] %vm665_vm2, %v813_v43  ;;  %v799_v45 = vadd.f32 %v1428_v61, %v770_v14 }
 0x127   :  { %v816_v44 = vmax.f32 %v800_v32, 0.0 }
 0x128   :  { %v815_v46 = vmax.f32 %v799_v45, 0.0 }
 0x129   :  { %832 = vst.msk [vmem:[%s1607_s3 + $0x78] sm:$0xff] %vm665_vm2, %v816_v44 }
 0x12a   :  { %831 = vst.msk [vmem:[%s1607_s3 + $0x70] sm:$0xff] %vm665_vm2, %v815_v46 }

// kernel: _lambda_.9
= control target key start
LH: loop header
LB: loop body
LE: loop exit
PB: predicated region body
PF: predicated region fallthrough
CT: control target
= control target key end

     0   :  { %vm42_vm0 = vcmask 293888   ;;  %vm91_vm1 = vcmask 1043456   ;;  %vm256_vm2 = vcmask 64512   ;;  %s530_s1 = inlined_call_operand.vmem [shape: f32[36,8], index: 1, kind: input, shape index: {}]   ;;  %s531_s0 = inlined_call_operand.vmem [shape: f32[1,128,36], index: 0, kind: input, shape index: {}]   ;;  %s532_s2 = inlined_call_operand.vmem [shape: f32[1,8], index: 2, kind: input, shape index: {}]   ;;  %s533_s3 = inlined_call_operand.vmem [shape: f32[128,8], index: 3, kind: output, shape index: {}]  }
   0x1   :  { %v30_v0 = vld [vmem:[%s530_s1] sm:$0xff]  ;;  %v31_v1 = vld [vmem:[%s530_s1 + $0x8] sm:$0xff]  ;;  %v32_v2 = vld [vmem:[%s530_s1 + $0x10] sm:$0xff] }
   0x2   :  { %v350_v3 = vpack.c.bf16 %v31_v1, %v30_v0  ;;  %v33_v4 = vld [vmem:[%s530_s1 + $0x18] sm:$0xff]  ;;  %v14_v5 = vld [vmem:[%s531_s0] sm:$0xff]  ;;  %v15_v9 = vld [vmem:[%s531_s0 + $0x8] sm:$0xff] }
   0x3   :  { %v354_v6 = vpack.c.bf16 %v33_v4, %v32_v2  ;;  %326 = vmatprep.mubr.msk.f32.mxu0 %vm42_vm0, %v14_v5  ;;  %v22_v7 = vld [vmem:[%s531_s0 + $0x40] sm:$0xff]  ;;  %v23_v10 = vld [vmem:[%s531_s0 + $0x48] sm:$0xff]  ;;  %v16_v11 = vld [vmem:[%s531_s0 + $0x10] sm:$0xff] }
   0x4   :  { %351 = vmatprep.subr.bf16.mxu0 %v350_v3  ;;  %358 = vmatprep.subr.bf16.mxu1 %v350_v3  ;;  %v34_v8 = vld [vmem:[%s530_s1 + $0x20] sm:$0xf]  ;;  %v24_v12 = vld [vmem:[%s531_s0 + $0x50] sm:$0xff]  ;;  %v17_v13 = vld [vmem:[%s531_s0 + $0x18] sm:$0xff] }
   0x5   :  { %353 = vmatpush3.bf16.msra.mxu0 %v350_v3  ;;  %361 = vmatpush3.bf16.msra.mxu1 %v350_v3  ;;  %v25_v14 = vld [vmem:[%s531_s0 + $0x58] sm:$0xff]  ;;  %v18_v15 = vld [vmem:[%s531_s0 + $0x20] sm:$0xff]  ;;  %v19_v17 = vld [vmem:[%s531_s0 + $0x28] sm:$0xff] }
   0x6   :  { %355 = vmatprep.subr.bf16.mxu0 %v354_v6  ;;  %359 = vmatprep.subr.bf16.mxu1 %v354_v6  ;;  %v26_v16 = vld [vmem:[%s531_s0 + $0x60] sm:$0xff]  ;;  %v27_v18 = vld [vmem:[%s531_s0 + $0x68] sm:$0xff]  ;;  %v20_v19 = vld [vmem:[%s531_s0 + $0x30] sm:$0xff] }
   0x7   :  { %338 = vmatprep.mubr.msk.f32.mxu1 %vm42_vm0, %v22_v7  ;;  %v28_v20 = vld [vmem:[%s531_s0 + $0x70] sm:$0xff]  ;;  %v21_v21 = vld [vmem:[%s531_s0 + $0x38] sm:$0xff]  ;;  %v277_v23 = vld [vmem:[%s532_s2] ss:$0 sm:$0xff] }
   0x8   :  { %v29_v22 = vld [vmem:[%s531_s0 + $0x78] sm:$0xff] }
   0x9   :  { %357 = vmatpush3.bf16.msra.mxu0 %v354_v6  ;;  %362 = vmatpush3.bf16.msra.mxu1 %v354_v6 }
   0xa   :  { %324 = vmatprep.subr.msk.mxu0 %vm91_vm1, %v34_v8  ;;  %360 = vmatprep.subr.msk.mxu1 %vm91_vm1, %v34_v8 }
   0xd   :  { %325 = vmatpush3.msk.msra.mxu0 %vm91_vm1, %v34_v8  ;;  %363 = vmatpush3.msk.msra.mxu1 %vm91_vm1, %v34_v8 }
   0xe   :  { %327 = vmatmul.mubr.msk.f32.vlgmr.msra.gmra.mrb[0].mxu0 %vm42_vm0, %v15_v9  ;;  %339 = vmatmul.mubr.msk.f32.vlgmr.msra.gmra.mrb[0].mxu1 %vm42_vm0, %v23_v10 }
   0xf   :  { %329 = vmatprep.mubr.msk.f32.mxu0 %vm42_vm0, %v16_v11  ;;  %341 = vmatprep.mubr.msk.f32.mxu1 %vm42_vm0, %v24_v12 }
  0x12   :  { %330 = vmatmul.mubr.msk.f32.gmra.mrb[2].mxu0 %vm42_vm0, %v17_v13  ;;  %342 = vmatmul.mubr.msk.f32.gmra.mrb[2].mxu1 %vm42_vm0, %v25_v14 }
  0x13   :  { %332 = vmatprep.mubr.msk.f32.mxu0 %vm42_vm0, %v18_v15  ;;  %344 = vmatprep.mubr.msk.f32.mxu1 %vm42_vm0, %v26_v16 }
  0x16   :  { %333 = vmatmul.mubr.msk.f32.gmra.mrb[4].mxu0 %vm42_vm0, %v19_v17  ;;  %345 = vmatmul.mubr.msk.f32.gmra.mrb[4].mxu1 %vm42_vm0, %v27_v18 }
  0x17   :  { %335 = vmatprep.mubr.msk.f32.mxu0 %vm42_vm0, %v20_v19  ;;  %347 = vmatprep.mubr.msk.f32.mxu1 %vm42_vm0, %v28_v20 }
  0x1a   :  { %336 = vmatmul.mubr.msk.f32.gmra.mrb[6].mxu0 %vm42_vm0, %v21_v21  ;;  %348 = vmatmul.mubr.msk.f32.gmra.mrb[6].mxu1 %vm42_vm0, %v29_v22 }
  0xe1   :  { %v328_v24 = vpop.f32.mrb[0].mxu0  ;;  %v340_v25 = vpop.f32.mrb[0].mxu1 }
  0xe2   :  { %v167_v26 = vadd.f32 %v328_v24, %v277_v23  ;;  %v207_v27 = vadd.f32 %v340_v25, %v277_v23  ;;  %v161_v28 = vpop.f32.mrb[1].mxu0  ;;  %v201_v29 = vpop.f32.mrb[1].mxu1 }
  0xe3   :  { %v162_v30 = vadd.f32 %v277_v23, %v161_v28  ;;  %v202_v31 = vadd.f32 %v277_v23, %v201_v29 }
  0xe4   :  { %v241_v32 = vmax.f32 %v167_v26, 0.0  ;;  %v249_v33 = vmax.f32 %v207_v27, 0.0 }
  0xe5   :  { %v240_v34 = vmax.f32 %v162_v30, 0.0  ;;  %v248_v35 = vmax.f32 %v202_v31, 0.0  ;;  %v331_v36 = vpop.f32.mrb[2].mxu0  ;;  %v343_v37 = vpop.f32.mrb[2].mxu1 }
  0xe6   :  { %258 = vst.msk [vmem:[%s533_s3 + $0x8] sm:$0xff] %vm256_vm2, %v241_v32  ;;  %266 = vst.msk [vmem:[%s533_s3 + $0x48] sm:$0xff] %vm256_vm2, %v249_v33  ;;  %v177_v38 = vadd.f32 %v331_v36, %v277_v23  ;;  %v217_v39 = vadd.f32 %v343_v37, %v277_v23  ;;  %v171_v40 = vpop.f32.mrb[3].mxu0  ;;  %v211_v41 = vpop.f32.mrb[3].mxu1 }
  0xe7   :  { %257 = vst.msk [vmem:[%s533_s3] sm:$0xff] %vm256_vm2, %v240_v34  ;;  %265 = vst.msk [vmem:[%s533_s3 + $0x40] sm:$0xff] %vm256_vm2, %v248_v35  ;;  %v172_v42 = vadd.f32 %v277_v23, %v171_v40  ;;  %v212_v43 = vadd.f32 %v277_v23, %v211_v41 }
  0xe8   :  { %v243_v44 = vmax.f32 %v177_v38, 0.0  ;;  %v251_v45 = vmax.f32 %v217_v39, 0.0 }
  0xe9   :  { %v242_v46 = vmax.f32 %v172_v42, 0.0  ;;  %v250_v47 = vmax.f32 %v212_v43, 0.0  ;;  %v334_v48 = vpop.f32.mrb[4].mxu0  ;;  %v346_v49 = vpop.f32.mrb[4].mxu1 }
  0xea   :  { %260 = vst.msk [vmem:[%s533_s3 + $0x18] sm:$0xff] %vm256_vm2, %v243_v44  ;;  %268 = vst.msk [vmem:[%s533_s3 + $0x58] sm:$0xff] %vm256_vm2, %v251_v45  ;;  %v187_v50 = vadd.f32 %v334_v48, %v277_v23  ;;  %v227_v51 = vadd.f32 %v346_v49, %v277_v23  ;;  %v181_v52 = vpop.f32.mrb[5].mxu0  ;;  %v221_v53 = vpop.f32.mrb[5].mxu1 }
  0xeb   :  { %259 = vst.msk [vmem:[%s533_s3 + $0x10] sm:$0xff] %vm256_vm2, %v242_v46  ;;  %267 = vst.msk [vmem:[%s533_s3 + $0x50] sm:$0xff] %vm256_vm2, %v250_v47  ;;  %v182_v54 = vadd.f32 %v277_v23, %v181_v52  ;;  %v222_v55 = vadd.f32 %v277_v23, %v221_v53 }
  0xec   :  { %v245_v56 = vmax.f32 %v187_v50, 0.0  ;;  %v253_v57 = vmax.f32 %v227_v51, 0.0 }
  0xed   :  { %v244_v58 = vmax.f32 %v182_v54, 0.0  ;;  %v252_v59 = vmax.f32 %v222_v55, 0.0  ;;  %v337_v60 = vpop.f32.mrb[6].mxu0  ;;  %v349_v61 = vpop.f32.mrb[6].mxu1 }
  0xee   :  { %262 = vst.msk [vmem:[%s533_s3 + $0x28] sm:$0xff] %vm256_vm2, %v245_v56  ;;  %270 = vst.msk [vmem:[%s533_s3 + $0x68] sm:$0xff] %vm256_vm2, %v253_v57  ;;  %v197_v62 = vadd.f32 %v337_v60, %v277_v23  ;;  %v237_v63 = vadd.f32 %v349_v61, %v277_v23  ;;  %v191_v0 = vpop.f32.mrb[7].mxu0  ;;  %v231_v1 = vpop.f32.mrb[7].mxu1 }
  0xef   :  { %261 = vst.msk [vmem:[%s533_s3 + $0x20] sm:$0xff] %vm256_vm2, %v244_v58  ;;  %269 = vst.msk [vmem:[%s533_s3 + $0x60] sm:$0xff] %vm256_vm2, %v252_v59  ;;  %v192_v2 = vadd.f32 %v277_v23, %v191_v0  ;;  %v232_v3 = vadd.f32 %v277_v23, %v231_v1 }
  0xf0   :  { %v247_v4 = vmax.f32 %v197_v62, 0.0  ;;  %v255_v5 = vmax.f32 %v237_v63, 0.0 }
  0xf1   :  { %v246_v6 = vmax.f32 %v192_v2, 0.0  ;;  %v254_v7 = vmax.f32 %v232_v3, 0.0 }
  0xf2   :  { %264 = vst.msk [vmem:[%s533_s3 + $0x38] sm:$0xff] %vm256_vm2, %v247_v4  ;;  %272 = vst.msk [vmem:[%s533_s3 + $0x78] sm:$0xff] %vm256_vm2, %v255_v5 }
  0xf3   :  { %263 = vst.msk [vmem:[%s533_s3 + $0x30] sm:$0xff] %vm256_vm2, %v246_v6  ;;  %271 = vst.msk [vmem:[%s533_s3 + $0x70] sm:$0xff] %vm256_vm2, %v254_v7 }

// kernel: _lambda_.10
= control target key start
LH: loop header
LB: loop body
LE: loop exit
PB: predicated region body
PF: predicated region fallthrough
CT: control target
= control target key end

     0   :  { %vm39_vm0 = vcmask 588800   ;;  %vm233_vm1 = vcmask 64512   ;;  %s541_s1 = inlined_call_operand.vmem [shape: f32[72,8], index: 1, kind: input, shape index: {}]   ;;  %s542_s0 = inlined_call_operand.vmem [shape: f32[4,32,72], index: 0, kind: input, shape index: {}]   ;;  %s543_s2 = inlined_call_operand.vmem [shape: f32[1,8], index: 2, kind: input, shape index: {}]   ;;  %s544_s3 = inlined_call_operand.vmem [shape: f32[32,8], index: 3, kind: output, shape index: {}]  }
   0x1   :  { %v30_v0 = vld [vmem:[%s541_s1] sm:$0xff]  ;;  %v31_v1 = vld [vmem:[%s541_s1 + $0x8] sm:$0xff]  ;;  %v32_v2 = vld [vmem:[%s541_s1 + $0x10] sm:$0xff] }
   0x2   :  { %v369_v3 = vpack.c.bf16 %v31_v1, %v30_v0  ;;  %v33_v4 = vld [vmem:[%s541_s1 + $0x18] sm:$0xff]  ;;  %v34_v6 = vld [vmem:[%s541_s1 + $0x20] sm:$0xff]  ;;  %v35_v7 = vld [vmem:[%s541_s1 + $0x28] sm:$0xff] }
   0x3   :  { %v373_v5 = vpack.c.bf16 %v33_v4, %v32_v2  ;;  %v14_v8 = vld [vmem:[%s542_s0] sm:$0xff]  ;;  %v377_v10 = vpack.c.bf16 %v35_v7, %v34_v6  ;;  %v36_v11 = vld [vmem:[%s541_s1 + $0x30] sm:$0xff]  ;;  %v37_v12 = vld [vmem:[%s541_s1 + $0x38] sm:$0xff] }
   0x4   :  { %370 = vmatprep.subr.bf16.mxu0 %v369_v3  ;;  %385 = vmatprep.subr.bf16.mxu1 %v369_v3  ;;  %v22_v9 = vld [vmem:[%s542_s0 + $0x40] sm:$0xff]  ;;  %v381_v13 = vpack.c.bf16 %v37_v12, %v36_v11  ;;  %v15_v15 = vld [vmem:[%s542_s0 + $0x8] sm:$0xff]  ;;  %v16_v17 = vld [vmem:[%s542_s0 + $0x10] sm:$0xff] }
   0x5   :  { %372 = vmatpush3.bf16.msra.mxu0 %v369_v3  ;;  %390 = vmatpush3.bf16.msra.mxu1 %v369_v3  ;;  %v38_v14 = vld [vmem:[%s541_s1 + $0x40] sm:$0xff]  ;;  %v23_v16 = vld [vmem:[%s542_s0 + $0x48] sm:$0xff]  ;;  %v24_v18 = vld [vmem:[%s542_s0 + $0x50] sm:$0xff] }
   0x6   :  { %374 = vmatprep.subr.bf16.mxu0 %v373_v5  ;;  %386 = vmatprep.subr.bf16.mxu1 %v373_v5  ;;  %v17_v19 = vld [vmem:[%s542_s0 + $0x18] sm:$0xff]  ;;  %v18_v21 = vld [vmem:[%s542_s0 + $0x20] sm:$0xff]  ;;  %v19_v23 = vld [vmem:[%s542_s0 + $0x28] sm:$0xff] }
   0x7   :  { %345 = vmatprep.mubr.msk.f32.mxu0 %vm39_vm0, %v14_v8  ;;  %357 = vmatprep.mubr.msk.f32.mxu1 %vm39_vm0, %v22_v9  ;;  %v25_v20 = vld [vmem:[%s542_s0 + $0x58] sm:$0xff]  ;;  %v26_v22 = vld [vmem:[%s542_s0 + $0x60] sm:$0xff]  ;;  %v27_v24 = vld [vmem:[%s542_s0 + $0x68] sm:$0xff] }
   0x8   :  { %v20_v25 = vld [vmem:[%s542_s0 + $0x30] sm:$0xff]  ;;  %v21_v27 = vld [vmem:[%s542_s0 + $0x38] sm:$0xff]  ;;  %v301_v55 = vld [vmem:[%s543_s2] ss:$0 sm:$0xff] }
   0x9   :  { %376 = vmatpush3.bf16.msra.mxu0 %v373_v5  ;;  %391 = vmatpush3.bf16.msra.mxu1 %v373_v5  ;;  %v28_v26 = vld [vmem:[%s542_s0 + $0x70] sm:$0xff]  ;;  %v29_v28 = vld [vmem:[%s542_s0 + $0x78] sm:$0xff] }
   0xa   :  { %378 = vmatprep.subr.bf16.mxu0 %v377_v10  ;;  %387 = vmatprep.subr.bf16.mxu1 %v377_v10 }
   0xd   :  { %380 = vmatpush3.bf16.msra.mxu0 %v377_v10  ;;  %392 = vmatpush3.bf16.msra.mxu1 %v377_v10 }
   0xe   :  { %382 = vmatprep.subr.bf16.mxu0 %v381_v13  ;;  %388 = vmatprep.subr.bf16.mxu1 %v381_v13 }
  0x11   :  { %384 = vmatpush3.bf16.msra.mxu0 %v381_v13  ;;  %393 = vmatpush3.bf16.msra.mxu1 %v381_v13 }
  0x12   :  { %343 = vmatprep.subr.mxu0 %v38_v14  ;;  %389 = vmatprep.subr.mxu1 %v38_v14 }
  0x15   :  { %344 = vmatpush3.msra.mxu0 %v38_v14  ;;  %394 = vmatpush3.msra.mxu1 %v38_v14 }
  0x16   :  { %346 = vmatmul.mubr.msk.f32.vlgmr.msra.gmra.mrb[0].mxu0 %vm39_vm0, %v15_v15  ;;  %358 = vmatmul.mubr.msk.f32.vlgmr.msra.gmra.mrb[0].mxu1 %vm39_vm0, %v23_v16 }
  0x17   :  { %348 = vmatprep.mubr.msk.f32.mxu0 %vm39_vm0, %v16_v17  ;;  %360 = vmatprep.mubr.msk.f32.mxu1 %vm39_vm0, %v24_v18 }
  0x1a   :  { %349 = vmatmul.mubr.msk.f32.gmra.mrb[2].mxu0 %vm39_vm0, %v17_v19  ;;  %361 = vmatmul.mubr.msk.f32.gmra.mrb[2].mxu1 %vm39_vm0, %v25_v20 }
  0x1b   :  { %351 = vmatprep.mubr.msk.f32.mxu0 %vm39_vm0, %v18_v21  ;;  %363 = vmatprep.mubr.msk.f32.mxu1 %vm39_vm0, %v26_v22 }
  0x1e   :  { %352 = vmatmul.mubr.msk.f32.gmra.mrb[4].mxu0 %vm39_vm0, %v19_v23  ;;  %364 = vmatmul.mubr.msk.f32.gmra.mrb[4].mxu1 %vm39_vm0, %v27_v24 }
  0x1f   :  { %354 = vmatprep.mubr.msk.f32.mxu0 %vm39_vm0, %v20_v25  ;;  %366 = vmatprep.mubr.msk.f32.mxu1 %vm39_vm0, %v28_v26 }
  0x22   :  { %355 = vmatmul.mubr.msk.f32.gmra.mrb[6].mxu0 %vm39_vm0, %v21_v27  ;;  %367 = vmatmul.mubr.msk.f32.gmra.mrb[6].mxu1 %vm39_vm0, %v29_v28 }
  0xe9   :  { %v347_v29 = vpop.f32.mrb[0].mxu0  ;;  %v359_v30 = vpop.f32.mrb[0].mxu1 }
  0xea   :  { %v154_v31 = vpop.f32.mrb[1].mxu0  ;;  %v194_v32 = vpop.f32.mrb[1].mxu1  ;;  %v241_v39 = vsel %vm233_vm1, %v347_v29, -inf  ;;  %v244_v46 = vsel %vm233_vm1, %v359_v30, -inf }
  0xeb   :  { %v234_v43 = vsel %vm233_vm1, %v154_v31, -inf  ;;  %v237_v49 = vsel %vm233_vm1, %v194_v32, -inf }
  0xed   :  { %v350_v33 = vpop.f32.mrb[2].mxu0  ;;  %v362_v34 = vpop.f32.mrb[2].mxu1 }
  0xee   :  { %v164_v35 = vpop.f32.mrb[3].mxu0  ;;  %v204_v36 = vpop.f32.mrb[3].mxu1  ;;  %v255_v54 = vsel %vm233_vm1, %v350_v33, -inf  ;;  %v258_v0 = vsel %vm233_vm1, %v362_v34, -inf }
  0xef   :  { %v248_v60 = vsel %vm233_vm1, %v164_v35, -inf  ;;  %v251_v4 = vsel %vm233_vm1, %v204_v36, -inf }
  0xf1   :  { %v353_v37 = vpop.f32.mrb[4].mxu0  ;;  %v365_v38 = vpop.f32.mrb[4].mxu1 }
  0xf2   :  { %v242_v40 = vsel %vm233_vm1, %v353_v37, -inf  ;;  %v174_v41 = vpop.f32.mrb[5].mxu0  ;;  %v214_v42 = vpop.f32.mrb[5].mxu1  ;;  %v246_v48 = vsel %vm233_vm1, %v365_v38, -inf }
  0xf3   :  { %v243_v44 = vmax.f32 %v241_v39, %v242_v40  ;;  %v235_v45 = vsel %vm233_vm1, %v174_v41, -inf  ;;  %v239_v52 = vsel %vm233_vm1, %v214_v42, -inf }
  0xf4   :  { %v236_v47 = vmax.f32 %v234_v43, %v235_v45 }
  0xf5   :  { %v245_v50 = vmax.f32 %v243_v44, %v244_v46  ;;  %v356_v51 = vpop.f32.mrb[6].mxu0  ;;  %v368_v53 = vpop.f32.mrb[6].mxu1 }
  0xf6   :  { %v256_v56 = vsel %vm233_vm1, %v356_v51, -inf  ;;  %v238_v57 = vmax.f32 %v236_v47, %v237_v49  ;;  %v184_v58 = vpop.f32.mrb[7].mxu0  ;;  %v224_v59 = vpop.f32.mrb[7].mxu1  ;;  %v260_v3 = vsel %vm233_vm1, %v368_v53, -inf }
  0xf7   :  { %v247_v61 = vmax.f32 %v245_v50, %v246_v48  ;;  %v257_v62 = vmax.f32 %v255_v54, %v256_v56  ;;  %v249_v63 = vsel %vm233_vm1, %v184_v58, -inf  ;;  %v253_v7 = vsel %vm233_vm1, %v224_v59, -inf }
  0xf8   :  { %v240_v1 = vmax.f32 %v238_v57, %v239_v52  ;;  %v250_v2 = vmax.f32 %v248_v60, %v249_v63 }
  0xf9   :  { %v270_v5 = vadd.f32 %v301_v55, %v247_v61  ;;  %v259_v6 = vmax.f32 %v257_v62, %v258_v0 }
  0xfa   :  { %v269_v8 = vadd.f32 %v301_v55, %v240_v1  ;;  %v252_v9 = vmax.f32 %v250_v2, %v251_v4 }
  0xfb   :  { %v274_v10 = vmax.f32 %v270_v5, 0.0  ;;  %v261_v11 = vmax.f32 %v259_v6, %v260_v3 }
  0xfc   :  { %v273_v12 = vmax.f32 %v269_v8, 0.0  ;;  %v254_v13 = vmax.f32 %v252_v9, %v253_v7 }
  0xfd   :  { %278 = vst.msk [vmem:[%s544_s3 + $0x8] sm:$0xff] %vm233_vm1, %v274_v10  ;;  %v272_v14 = vadd.f32 %v301_v55, %v261_v11 }
  0xfe   :  { %277 = vst.msk [vmem:[%s544_s3] sm:$0xff] %vm233_vm1, %v273_v12  ;;  %v271_v15 = vadd.f32 %v301_v55, %v254_v13 }
  0xff   :  { %v276_v16 = vmax.f32 %v272_v14, 0.0 }
 0x100   :  { %v275_v17 = vmax.f32 %v271_v15, 0.0 }
 0x101   :  { %280 = vst.msk [vmem:[%s544_s3 + $0x18] sm:$0xff] %vm233_vm1, %v276_v16 }
 0x102   :  { %279 = vst.msk [vmem:[%s544_s3 + $0x10] sm:$0xff] %vm233_vm1, %v275_v17 }

// kernel: _lambda_.11
= control target key start
LH: loop header
LB: loop body
LE: loop exit
PB: predicated region body
PF: predicated region fallthrough
CT: control target
= control target key end

     0   :  { %v133_v0 = vmov 0.0|0.0   ;;  %vm134_vm0 = vmmov 0   ;;  %v135_v4 = vmov 0.0   ;;  %vm26_vm1 = vcmask 261120   ;;  %s177_s1 = inlined_call_operand.vmem [shape: f32[32,96], index: 1, kind: input, shape index: {}]   ;;  %s178_s0 = inlined_call_operand.vmem [shape: f32[8,32], index: 0, kind: input, shape index: {}]   ;;  %s179_s2 = inlined_call_operand.vmem [shape: f32[1,96], index: 2, kind: input, shape index: {}]   ;;  %s180_s3 = inlined_call_operand.vmem [shape: f32[8,96], index: 3, kind: output, shape index: {}]  }
   0x1   :  { %124 = vmatprep.subr.bf16.mxu0 %v133_v0  ;;  %v15_v1 = vld [vmem:[%s177_s1] sm:$0xff]  ;;  %v16_v2 = vld [vmem:[%s177_s1 + $0x8] sm:$0xff]  ;;  %v17_v3 = vld [vmem:[%s177_s1 + $0x10] sm:$0xff]  ;;  %121 = vmatprep.mubr.msk.f32.mxu0 %vm134_vm0, %v135_v4  ;;  %vm100_vm2 = vcmask 785408  }
   0x2   :  { %v125_v5 = vpack.c.bf16 %v16_v2, %v15_v1  ;;  %v18_v6 = vld [vmem:[%s177_s1 + $0x18] sm:$0xff]  ;;  %v14_v8 = vld [vmem:[%s178_s0] sm:$0xff] }
   0x3   :  { %v128_v7 = vpack.c.bf16 %v18_v6, %v17_v3  ;;  %v106_v9 = vld [vmem:[%s179_s2] ss:$0 sm:$0xff] }
   0x4   :  { %126 = vmatpush3.bf16.msra.mxu0 %v125_v5 }
   0x5   :  { %127 = vmatprep.subr.bf16.mxu0 %v133_v0 }
   0x8   :  { %129 = vmatpush3.bf16.msra.mxu0 %v128_v7 }
   0xb   :  { %122 = vmatmul.mubr.msk.f32.vlgmr.msra.gmra.mrb[0].mxu0 %vm26_vm1, %v14_v8 }
  0xde   :  { %v96_v10 = vpop.f32.mrb[0].mxu0 }
  0xdf   :  { %v97_v11 = vadd.f32 %v106_v9, %v96_v10  ;;  %v123_v12 = vpop.f32.mrb[1].mxu0 }
  0xe1   :  { %101 = vst.msk [vmem:[%s180_s3] sm:$0xff] %vm100_vm2, %v97_v11 }

// kernel: _lambda_.13
= control target key start
LH: loop header
LB: loop body
LE: loop exit
PB: predicated region body
PF: predicated region fallthrough
CT: control target
= control target key end

     0   :  { %8 = vsyncpa [#allocation6], 0  ;;  %s845_s0 = inlined_call_operand.vmem [shape: f32[4,2,32], index: 0, kind: input, shape index: {}]   ;;  %s846_s1 = inlined_call_operand.vmem [shape: f32[5,32,256], index: 1, kind: input, shape index: {}]   ;;  %s847_s2 = inlined_call_operand.vmem [shape: f32[5,1,256], index: 2, kind: input, shape index: {}]   ;;  %s848_s3 = inlined_call_operand.hbm [shape: f32[2,640], index: 3, kind: output, shape index: {}]  }
   0x1   :  { %10 = vsyncpa [#allocation6 + $0x1], 0  ;;  %s692_s12 = smov 0   ;;  %s694_s13 = smov 0  }
   0x2   :  { %s696_s14 = smov 0   ;;  %s698_s15 = smov 0  }
   0x3   :  { %s700_s16 = smov 0   ;;  %s702_s17 = smov 0  }
   0x4   :  { %s704_s18 = smov 0   ;;  %s706_s19 = smov 0  }
   0x5 LB: > { %s461_s20 = sadd.s32 4294967295, %s666_s19   ;;  %s462_s21 = sadd.s32 4294967294, %s666_s19   ;;  %s666_s19 = sphi %s706_s19, %s16_s19   ;;  %s662_s18 = sphi %s704_s18, %s864_s18   ;;  %s658_s17 = sphi %s702_s17, %s863_s17   ;;  %s654_s16 = sphi %s700_s16, %s862_s16   ;;  %s650_s15 = sphi %s698_s15, %s861_s15   ;;  %s646_s14 = sphi %s696_s14, %s860_s14   ;;  %s642_s13 = sphi %s694_s13, %s859_s13   ;;  %s638_s12 = sphi %s692_s12, %s858_s12  }
   0x6   : > { %s25_s22 = sadd.s32 1, %s658_s17  ;;  %s28_s23 = sadd.s32 1, %s662_s18 }
   0x7   : > { %p26_p0 = scmp.ge.s32.totalorder %s25_s22, 4  ;;  %p123_p1 = scmp.ne.s32.totalorder %s646_s14, %s642_s13 }
   0x8   : > { %p124_p2 = scmp.eq.s32.totalorder %s461_s20, 19  ;;  %p129_p4 = scmp.ne.s32.totalorder %s642_s13, %s638_s12 }
   0x9   : > { %s866_s22 = smov (%p26_p0, %s25_s22), 0  ;;  %s868_s23 = smov (!%p26_p0, %s28_s23), %s662_s18 }
   0xa   : > { %851 = sst [smem:[#allocation8_spill]] %s866_s22  ;;  %p741_p3 = por %p124_p2, %p123_p1 }
   0xb   : > { %p30_p5 = scmp.ge.s32.totalorder %s868_s23, 5  ;;  %p130_p6 = scmp.eq.s32.totalorder %s462_s21, 19 }
   0xc   : > { %p465_p7 = scmp.ge.s32.totalorder %s666_s19, 1  ;;  %p170_p8 = scmp.lt.s32.totalorder %s666_s19, 21 }
   0xd   : > { %s870_s23 = smov (%p30_p5, %s868_s23), 0  ;;  %p751_p9 = por %p130_p6, %p129_p4 }
   0xe   : > { %853 = sst [smem:[#allocation9_spill]] %s870_s23  ;;  %p171_p10 = pnand %p465_p7, %p170_p8 }
   0xf   : > { %s110_s26 = ssub.s32 %s662_s18, %s870_s23  ;;  %s113_s27 = sadd.s32 1, %s646_s14 }
  0x10   : > { %p111_p11 = scmp.eq.s32.totalorder %s110_s26, 0  ;;  %174 = sbr.rel (%p171_p10) target bundleno = 327 (0x147), region = 32 }
  0x11   : > { %s850_s29 = sand.u32 (!%p171_p10), 1, %s642_s13   ;;  %p202_p12 = scmp.lt.s32.totalorder (!%p171_p10), %s650_s15, 3 }
  0x12   : > { %s759_s28 = scalar_select %p111_p11, %s646_s14, %s113_s27  }
  0x13   : > { %s765_s30 = sshll.u32 (!%p171_p10), %s850_s29, 1  ;;  %p206_p13 = scmp.lt.s32.totalorder (!%p171_p10), %s654_s16, 4 }
  0x14   : > { %s201_s22 = scalar_lea.vmem (!%p171_p10), [#allocation5], %s765_s30  ;;  %p471_p0 = scmp.ne.s32.totalorder (!%p171_p10), %s650_s15, 0 }
  0x17   : > { %s203_s4 = scalar_select %p202_p12, %s650_s15, 3 }
  0x18   : > { %s207_s5 = scalar_select %p206_p13, %s654_s16, 4 }
  0x19   : > { %s467_s6 = sshll.u32 %s203_s4, 1  ;;  %218 = sbr.rel (%p471_p0) target bundleno = 32 (0x20), region = 36  ;;  %v668_v0 = vmov (!%p471_p0), -inf   ;;  %v669_v1 = vmov (!%p471_p0), 0.0  }
  0x1a   : > { %s773_s9 = scalar_lea.vmem %s845_s0, %s467_s6  ;;  %s479_s10 = sshll.u32 %s207_s5, 6  ;;  %219 = vst [vmem:[#allocation2] sm:$0x3] (!%p471_p0), %v668_v0  ;;  %220 = vst [vmem:[#allocation3] sm:$0x3] (!%p471_p0), %v669_v1 }
  0x1b   : > { %s210_s21 = scalar_lea.vmem %s846_s1, %s479_s10  ;;  %s470_s26 = sshll.u32 %s207_s5, 1  ;;  %221 = vst [vmem:[#allocation4] sm:$0x3] (!%p471_p0), %v669_v1 }
  0x1c   : > { %s781_s29 = scalar_lea.vmem %s847_s2, %s470_s26 }
  0x20 PF: > { %v224_v2 = vld [vmem:[%s210_s21 + $0x8] sm:$0xff]  ;;  %v226_v3 = vld [vmem:[%s210_s21 + $0x18] sm:$0xff]  ;;  %v223_v4 = vld [vmem:[%s210_s21] sm:$0xff]  ;;  %v670_v9 = vmov 0.0   ;;  %vm243_vm0 = vcmask 261120   ;;  %v233_v16 = vlaneseq  ;;  %p474_p1 = scmp.ne.s32.totalorder %s650_s15, 3 }
  0x21   : > { %v480_v5 = vpack.c.bf16 %v226_v3, %v224_v2  ;;  %v225_v6 = vld [vmem:[%s210_s21 + $0x10] sm:$0xff]  ;;  %v228_v7 = vld [vmem:[%s210_s21 + $0x28] sm:$0xff]  ;;  %v230_v8 = vld [vmem:[%s210_s21 + $0x38] sm:$0xff]  ;;  %311 = vmatprep.mubr.f32.mxu0 %v670_v9 }
  0x22   : > { %v482_v10 = vpack.c.bf16 %v225_v6, %v223_v4  ;;  %v484_v11 = vpack.c.bf16 %v230_v8, %v228_v7  ;;  %v227_v12 = vld [vmem:[%s210_s21 + $0x20] sm:$0xff]  ;;  %v229_v13 = vld [vmem:[%s210_s21 + $0x30] sm:$0xff]  ;;  %v234_v17 = vshrl.u32 %v233_v16, 7 }
  0x23   : > { %481 = vmatprep.subr.bf16.mxu0 %v480_v5  ;;  %v486_v14 = vpack.c.bf16 %v229_v13, %v227_v12  ;;  %v222_v15 = vld [vmem:[%s773_s9] sm:$0x3]  ;;  %v334_v36 = vld [vmem:[#allocation3] sm:$0x3]  ;;  %v338_v43 = vld [vmem:[#allocation4] sm:$0x3] }
  0x24   : > { %483 = vmatpush1.bf16.msra.mxu0 %v482_v10  ;;  %v235_v18 = vsub.s32 0, %v234_v17  ;;  %v231_v19 = vld [vmem:[%s781_s29] sm:$0x3]  ;;  %v239_v20 = vsub.s32 1, %v234_v17 }
  0x25   : > { %485 = vmatprep.subr.bf16.mxu0 %v484_v11  ;;  %v326_v26 = vld [vmem:[#allocation2] sm:$0x3] }
  0x26   : > { %v236_v21 = vrot.slane %v231_v19, %v235_v18  ;;  %v240_v22 = vrot.slane %v231_v19, %v239_v20 }
  0x28   : > { %487 = vmatpush1.bf16.msra.mxu0 %v486_v14 }
  0x2b   : > { %472 = vmatmul.mubr.msk.f32.vlgmr.msra.gmra.mrb[0].mxu0 %vm243_vm0, %v222_v15 }
  0xfe   : > { %v313_v23 = vpop.f32.mrb[0].mxu0 }
  0xff   : > { %v314_v24 = vadd.f32 %v313_v23, %v236_v21  ;;  %v315_v25 = vpop.f32.mrb[1].mxu0 }
 0x100   : > { %v316_v27 = vadd.f32 %v315_v25, %v240_v22 }
 0x101   : > { %v473_v28 = vmul.f32 -1.442695, %v314_v24 }
 0x102   : > { %v327_v29 = vmax.f32 %v326_v26, %v316_v27 }
 0x103   : > { %562 = vpow2.f32 %v473_v28 }
 0x104   : > { %v328_v30 = vsub.f32 %v326_v26, %v327_v29  ;;  %v331_v31 = vsub.f32 %v316_v27, %v327_v29  ;;  %343 = vst [vmem:[#allocation2] sm:$0x3] %v327_v29 }
 0x106   : > { %v329_v32 = vmul.f32 1.442695, %v328_v30  ;;  %v332_v33 = vmul.f32 1.442695, %v331_v31 }
 0x108   : > { %564 = vpow2.f32 %v329_v32 }
 0x109   : > { %566 = vpow2.f32 %v332_v33 }
 0x10d   : > { %v563_v34 = vpop.eup %562 }
 0x10e   : > { %v321_v35 = vadd.f32 1.0, %v563_v34 }
 0x110   : > { %568 = vrcp.f32 %v321_v35 }
 0x112   : > { %v565_v37 = vpop.eup %564 }
 0x113   : > { %v335_v38 = vmul.f32 %v565_v37, %v334_v36  ;;  %v567_v39 = vpop.eup %566  ;;  %v339_v45 = vmul.f32 %v565_v37, %v338_v43 }
 0x115   : > { %v336_v40 = vadd.f32 %v567_v39, %v335_v38 }
 0x117   : > { %337 = vst [vmem:[#allocation3] sm:$0x3] %v336_v40 }
 0x11a   : > { %v569_v41 = vpop.eup %568 }
 0x11b   : > { %v324_v42 = vmax.f32 %v569_v41, 1e-07 }
 0x11d   : > { %v325_v44 = vmin.f32 %v324_v42, 0.9999999  ;;  %347 = sbr.rel (%p474_p1) target bundleno = 302 (0x12e), region = 40 }
 0x11e   : > { %v349_v48 = vld [vmem:[#allocation3] sm:$0x3] (!%p474_p1) }
 0x11f   : > { %v340_v46 = vmul.f32 %v567_v39, %v325_v44  ;;  %570 = vrcp.f32 (!%p474_p1), %v349_v48 }
 0x121   : > { %v341_v47 = vadd.f32 %v340_v46, %v339_v45 }
 0x123   : > { %342 = vst [vmem:[#allocation4] sm:$0x3] %v341_v47 }
 0x129   : > { %v571_v50 = vpop.eup %570 }
 0x12a   : > { %v348_v49 = vld [vmem:[#allocation4] sm:$0x3] }
 0x12b   : > { %v351_v51 = vmul.f32 %v571_v50, %v348_v49 }
 0x12d   : > { %352 = vst [vmem:[%s201_s22] sm:$0x3] %v351_v51 }
 0x12e PF: > { %s476_s23 = sshll.u32 %s654_s16, 5  ;;  %s367_s15 = sshll.u32 %s201_s22, 4  ;;  %s368_s15 = int_to_ptr.vmem [resolvable:$true] %s367_s15 }
 0x12f   : > { %s794_s5 = scalar_lea.hbm %s848_s3, %s476_s23  ;;  %s855_s6 = sand.u32 1, %s642_s13  }
 0x130   : > { %s354_s7 = scalar_lea.sflag [#allocation6], %s855_s6  ;;  %s572_s8 = scalar_lea.vmem %s368_s15, 32 }
 0x131   : > { %p573_p2 = scmp.ne.s32.totalorder %s368_s15, %s572_s8  ;;  %s671_s9 = smov [#allocation5]  }
 0x132   : > { %s576_s10 = sshll.u32 %s671_s9, 4  ;;  %s577_s10 = int_to_ptr.vmem [resolvable:$false] %s576_s10 }
 0x133   : > { %p574_p4 = pnand %p573_p2, %p741_p3  ;;  %s578_s11 = scalar_lea.vmem %s577_s10, 64 }
 0x134   : > { %p579_p6 = scmp.lt.s32.totalorder %s368_s15, %s577_s10  ;;  %p580_p7 = scmp.lt.s32.totalorder %s578_s11, %s572_s8 }
 0x135   : > { %p575_p5 = pneg %p574_p4 }
 0x136   : > { %p581_p8 = por %p580_p7, %p579_p6 }
 0x138   : > { %p582_p10 = pnand %p581_p8, %p575_p5 }
 0x13a   : > { %585 = shalt.err (!%p582_p10)
}
 0x13b   : > { %s586_s16 = scalar_lea.hbm %s794_s5, 32  ;;  %s590_s20 = scalar_lea.hbm %s848_s3, 160 }
 0x13c   : > { %p587_p11 = scmp.ne.s32.totalorder %s794_s5, %s586_s16  ;;  %p591_p0 = scmp.lt.u32.totalorder %s794_s5, %s848_s3 }
 0x13d   : > { %p592_p1 = scmp.lt.u32.totalorder %s590_s20, %s586_s16  ;;  %p594_p4 = scmp.lt.u32.totalorder %s586_s16, %s794_s5 }
 0x13e   : > { %p588_p12 = pnand %p587_p11, %p741_p3 }
 0x13f   : > { %p593_p2 = por %p592_p1, %p591_p0 }
 0x140   : > { %p589_p13 = pneg %p588_p12 }
 0x141   : > { %p595_p5 = por %p594_p4, %p593_p2 }
 0x143   : > { %p596_p6 = pnand %p595_p5, %p589_p13 }
 0x145   : > { %599 = shalt.err (!%p596_p6)
}
 0x146   : > { %488 = dma.vmem_to_hbm [thread:$0]  (%p741_p3), %s368_s15, 32, %s794_s5, %s354_s7  }
 0x147 PF: > { %p494_p7 = scmp.ge.s32.totalorder %s666_s19, 2  ;;  %s379_s27 = sand.u32 1, %s638_s12  }
 0x148   : > { %s380_s23 = scalar_lea.sflag [#allocation6], %s379_s27 }
 0x149   : > { %p491_p8 = pnand %p494_p7, %p751_p9 }
 0x14b   : > { %633 = dma.done.wait (!%p491_p8), %s380_s23, 32  }
 0x14c   : > { %635 = vsyncadd (!%p491_p8), %s380_s23, 4294967264  ;;  %s16_s19 = sadd.s32 1, %s666_s19   ;;  %s856_s24 = sld [smem:[#allocation8_spill]] }
 0x14d   : > { %p13_p10 = scmp.ge.s32.totalorder %s16_s19, 22   ;;  %s857_s29 = sld [smem:[#allocation9_spill]] }
 0x14e   : > { %s858_s12 = smov %s642_s13  ;;  %s859_s13 = smov %s646_s14 }
 0x14f   : > { %s860_s14 = smov %s759_s28  ;;  %s861_s15 = smov %s658_s17 }
 0x150   : > { %s862_s16 = smov %s662_s18  ;;  %15 = sbr.rel (!%p13_p10) target bundleno = 5 (0x5), region = 81 }
 0x152   : > { %s863_s17 = smov %s856_s24 }
 0x153   : > { %s864_s18 = smov %s857_s29 }
 0x157   :  { %385 = vsyncpa [#allocation6], 1 }
 0x158   :  { %387 = vsyncpa [#allocation6 + $0x1], 1 }

// kernel: _lambda_.12
= control target key start
LH: loop header
LB: loop body
LE: loop exit
PB: predicated region body
PF: predicated region fallthrough
CT: control target
= control target key end

     0   :  { %vm25_vm0 = vcmask 123904   ;;  %v371_v0 = vmov 0.0   ;;  %s491_s0 = inlined_call_operand.vmem [shape: f32[4,2,48], index: 0, kind: input, shape index: {}]   ;;  %s492_s1 = inlined_call_operand.vmem [shape: f32[4,2,48], index: 1, kind: input, shape index: {}]   ;;  %s493_s2 = inlined_call_operand.vmem [shape: f32[16,48], index: 2, kind: input, shape index: {}]   ;;  %s494_s3 = inlined_call_operand.vmem [shape: f32[1,48], index: 3, kind: input, shape index: {}]   ;;  %s495_s4 = inlined_call_operand.vmem [shape: f32[16,48], index: 4, kind: input, shape index: {}]   ;;  %s496_s5 = inlined_call_operand.vmem [shape: f32[1,48], index: 5, kind: input, shape index: {}]   ;;  %s497_s6 = inlined_call_operand.vmem [shape: f32[4,2,16], index: 6, kind: output, shape index: {0}]   ;;  %s498_s7 = inlined_call_operand.vmem [shape: f32[4,2,16], index: 7, kind: output, shape index: {1}]  }
   0x1   :  { %26 = vst.msk [vmem:[#allocation2] sm:$0x3] %vm25_vm0, %v371_v0  ;;  %27 = vst.msk [vmem:[#allocation3] sm:$0x3] %vm25_vm0, %v371_v0  ;;  %v424_v1 = vld [vmem:[%s493_s2] sm:$0xff]  ;;  %v429_v2 = vld [vmem:[%s493_s2 + $0x8] sm:$0xff] }
   0x2   :  { %v434_v3 = vld [vmem:[%s494_s3] ss:$0 sm:$0xff]  ;;  %v444_v5 = vld [vmem:[%s495_s4 + $0x8] sm:$0xff]  ;;  %s451_s2 = smov 0  }
   0x3   :  { %v439_v4 = vld [vmem:[%s495_s4] sm:$0xff] }
   0x4   :  { %v449_v6 = vld [vmem:[%s496_s5] ss:$0 sm:$0xff] }
   0x5 LB: > { %v330_v7 = vpack.c.bf16 %v429_v2, %v424_v1  ;;  %v372_v8 = vmov 0.0|0.0   ;;  %vm373_vm1 = vmmov 0   ;;  %v374_v9 = vmov 0.0   ;;  %s375_s3 = smov 96   ;;  %s301_s4 = sshll.u32 %s369_s2, 1  ;;  %s369_s2 = sphi %s451_s2, %s39_s2  }
   0x6   : > { %329 = vmatprep.subr.bf16.mxu0 %v372_v8  ;;  %319 = vmatprep.mubr.msk.f32.mxu0 %vm373_vm1, %v374_v9  ;;  %v333_v10 = vpack.c.bf16 %v444_v5, %v439_v4  ;;  %vm55_vm2 = vcmask 130048   ;;  %s40_s5 = ssub.s32 3, %s369_s2  ;;  %s42_s15 = scalar_lea.vmem %s491_s0, %s301_s4 }
   0x7   : > { %331 = vmatpush3.bf16.msra.mxu0 %v330_v7  ;;  %332 = vmatprep.subr.bf16.mxu1 %v372_v8  ;;  %s469_s16 = sshll.u32 %s40_s5, 1  ;;  %v43_v19 = vld [vmem:[%s42_s15] sm:$0x3]  ;;  %s376_s20 = smov 32  }
   0x8   : > { %v47_v11 = vld [vmem:[#allocation2] sm:$0x3]  ;;  %334 = vmatpush3.bf16.msra.mxu1 %v333_v10  ;;  %326 = vmatprep.mubr.msk.f32.mxu1 %vm373_vm1, %v374_v9  ;;  %v48_v12 = vld [vmem:[#allocation3] sm:$0x3]  ;;  %s45_s19 = scalar_lea.vmem %s492_s1, %s469_s16  ;;  %s377_s21 = smov 16  }
   0x9   : > { %v46_v21 = vld [vmem:[%s45_s19] sm:$0x3]  ;;  %s378_s22 = smov 112   ;;  %s276_s25 = scalar_lea.vmem %s497_s6, %s301_s4 }
   0xa   : > { %320 = vmatmul.mubr.msk.f32.vlgmr.msra.gmra.mrb[0].mxu0 %vm55_vm2, %v47_v11  ;;  %s278_s28 = scalar_lea.vmem %s498_s7, %s469_s16  ;;  %s39_s2 = sadd.s32 1, %s369_s2  }
   0xb   : > { %327 = vmatmul.mubr.msk.f32.vlgmr.msra.gmra.mrb[0].mxu1 %vm55_vm2, %v48_v12  ;;  %p36_p0 = scmp.ge.s32.totalorder %s39_s2, 4  }
  0xdd   : > { %v125_v13 = vpop.f32.mrb[0].mxu0 }
  0xde   : > { %v126_v14 = vadd.f32 %v434_v3, %v125_v13  ;;  %v321_v15 = vpop.f32.mrb[1].mxu0  ;;  %v204_v16 = vpop.f32.mrb[0].mxu1 }
  0xdf   : > { %v328_v17 = vpop.f32.mrb[1].mxu1  ;;  %v205_v18 = vadd.f32 %v449_v6, %v204_v16 }
  0xe0   : > { %216 = vrot.lane.b32.xlu0 %v126_v14, %s375_s3  ;;  %v208_v20 = vadd.f32 %v126_v14, %v43_v19 }
  0xe1   : > { %v237_v23 = vadd.f32 %v205_v18, %v46_v21 }
  0xe2   : > { %v307_v22 = vmul.f32 -1.442695, %v208_v20 }
  0xe3   : > { %v308_v24 = vmul.f32 -1.442695, %v237_v23 }
  0xe4   : > { %245 = vrot.lane.b32.xlu0 %v205_v18, %s375_s3  ;;  %351 = vpow2.f32 %v307_v22 }
  0xe5   : > { %353 = vpow2.f32 %v308_v24 }
  0xee   : > { %v352_v25 = vpop.eup %351 }
  0xef   : > { %v212_v26 = vadd.f32 1.0, %v352_v25  ;;  %v354_v27 = vpop.eup %353 }
  0xf0   : > { %v241_v28 = vadd.f32 1.0, %v354_v27 }
  0xf1   : > { %355 = vrcp.f32 %v212_v26 }
  0xf2   : > { %357 = vrcp.f32 %v241_v28 }
  0xfb   : > { %v356_v29 = vpop.eup %355 }
  0xfc   : > { %v358_v32 = vpop.eup %357  ;;  %v226_v42 = vsub.f32 1.0, %v356_v29 }
  0xfd   : > { %v255_v48 = vsub.f32 1.0, %v358_v32 }
 0x152   : > { %v217_v30 = vpop.permute.xlu0 %216 }
 0x153   : > { %v219_v31 = vmul.f32 %v356_v29, %v217_v30 }
 0x155   : > { %221 = vrot.lane.b32.xlu1 %v219_v31, %s376_s20 }
 0x156   : > { %v246_v33 = vpop.permute.xlu0 %245 }
 0x157   : > { %v248_v34 = vmul.f32 %v358_v32, %v246_v33 }
 0x159   : > { %250 = vrot.lane.b32.xlu1 %v248_v34, %s376_s20 }
 0x15d   : > { %232 = vrot.lane.b32.xlu1 %v47_v11, %s377_s21 }
 0x161   : > { %261 = vrot.lane.b32.xlu1 %v48_v12, %s377_s21 }
 0x1c7   : > { %v222_v35 = vpop.permute.xlu1 %221 }
 0x1c8   : > { %v224_v36 = vadd.f32 %v222_v35, %v43_v19 }
 0x1ca   : > { %359 = vtanh.f32 %v224_v36 }
 0x1cb   : > { %v251_v37 = vpop.permute.xlu1 %250 }
 0x1cc   : > { %v253_v38 = vadd.f32 %v251_v37, %v46_v21 }
 0x1ce   : > { %361 = vtanh.f32 %v253_v38 }
 0x1cf   : > { %v233_v41 = vpop.permute.xlu1 %232 }
 0x1d0   : > { %v235_v44 = vmul.f32 %v356_v29, %v233_v41 }
 0x1d3   : > { %v262_v46 = vpop.permute.xlu1 %261 }
 0x1d4   : > { %v360_v39 = vpop.eup %359  ;;  %v264_v50 = vmul.f32 %v358_v32, %v262_v46 }
 0x1d5   : > { %228 = vrot.lane.b32.xlu0 %v360_v39, %s378_s22 }
 0x1d8   : > { %v362_v40 = vpop.eup %361 }
 0x1d9   : > { %257 = vrot.lane.b32.xlu0 %v362_v40, %s378_s22 }
 0x247   : > { %v229_v43 = vpop.permute.xlu0 %228 }
 0x248   : > { %v231_v45 = vmul.f32 %v229_v43, %v226_v42 }
 0x24a   : > { %v236_v47 = vadd.f32 %v235_v44, %v231_v45 }
 0x24b   : > { %v258_v49 = vpop.permute.xlu0 %257 }
 0x24c   : > { %v260_v51 = vmul.f32 %v258_v49, %v255_v48  ;;  %267 = vrot.lane.b32.xlu0 %v236_v47, %s378_s22 }
 0x24e   : > { %v265_v52 = vadd.f32 %v264_v50, %v260_v51 }
 0x250   : > { %272 = vrot.lane.b32.xlu1 %v265_v52, %s378_s22 }
 0x2bd   :  { %38 = sbr.rel (!%p36_p0) target bundleno = 5 (0x5), region = 63 }
 0x2be   : > { %v268_v53 = vpop.permute.xlu0 %267 }
 0x2bf   : > { %270 = vst.msk [vmem:[#allocation2] sm:$0x3] %vm25_vm0, %v268_v53  ;;  %277 = vst.msk [vmem:[%s276_s25] sm:$0x3] %vm25_vm0, %v268_v53 }
 0x2c2   : > { %v273_v54 = vpop.permute.xlu1 %272 }
 0x2c3   : > { %275 = vst.msk [vmem:[#allocation3] sm:$0x3] %vm25_vm0, %v273_v54  ;;  %279 = vst.msk [vmem:[%s278_s28] sm:$0x3] %vm25_vm0, %v273_v54 }

</bundles_post_ra>
